<compile_context>
chip_gen: v7x
topology: tpu7x:2x2x1
jax: 0.10.0
libtpu: 0.0.40
codegen_flags: <defaults>
</compile_context>

<pallas_src>
import jax
import jax.numpy as jnp
import numpy as np
from jax.experimental import pallas as pl
from jax.experimental.pallas import tpu as pltpu


LANE = 128   # lane width; all channel dims padded to this
SUB = 8      # sublane granularity


def _round_up(x, m):
    return (x + m - 1) // m * m


def _pad2(a, rows, cols, dtype=jnp.float32):
    a = jnp.asarray(a, jnp.float32)
    a = jnp.pad(a, ((0, rows - a.shape[0]), (0, cols - a.shape[1])))
    return a.astype(dtype)


# --------------------------------------------------------------------------
# Fused Pallas kernel: all MP layers + mean pool + final Linear in one body
# --------------------------------------------------------------------------
def _make_fused_kernel(n_layers):
    def kernel(*refs):
        (x_ref, g_ref, s_ref, invd_ref, ea_ref, p_ref, invc_ref) = refs[:7]
        layer_refs = refs[7:7 + 10 * n_layers]
        wl_ref, bl_ref, out_ref = refs[7 + 10 * n_layers:]

        g = g_ref[...]            # bf16 0/1 gather matrix      [E, N]
        s = s_ref[...]            # bf16 0/1 scatter matrix     [N, E]
        inv_deg = invd_ref[...]   # f32 1/max(in-degree, 1)     [N, 1]
        ea = ea_ref[...]          # f32 edge_attr (unsqueezed)  [E, 1]

        h = x_ref[...].astype(jnp.float32)   # activations kept f32 on the VPU

        for i in range(n_layers):
            (we_ref, mw1_ref, mb1_ref, mw2_ref, mb2_ref,
             uw1a_ref, uw1b_ref, ub1_ref, uw2_ref, ub2_ref) = \
                layer_refs[10 * i:10 * (i + 1)]

            hb = h.astype(jnp.bfloat16)
            # gather x[source] as a 0/1 bf16 matmul (exact row selection)
            x_src = jnp.dot(g, hb, preferred_element_type=jnp.float32)
            # message_mlp: Linear -> ReLU -> Linear   (bf16 MXU, f32 accum/VPU)
            h1 = jnp.maximum(
                jnp.dot(x_src.astype(jnp.bfloat16), mw1_ref[...],
                        preferred_element_type=jnp.float32) + mb1_ref[...], 0.0)
            msg = jnp.dot(h1.astype(jnp.bfloat16), mw2_ref[...],
                          preferred_element_type=jnp.float32) + mb2_ref[...]
            # edge_encoder Linear(1, C, bias=False) == broadcast multiply on VPU
            # (avoids a wasted K=1 MXU pass)
            msg = msg * (ea * we_ref[...])
            # scatter_mean: un-normalized 0/1 bf16 scatter, f32 1/deg post-scale
            agg = jnp.dot(s, msg.astype(jnp.bfloat16),
                          preferred_element_type=jnp.float32) * inv_deg
            # update_mlp on concat([x, agg]) folded into split-weight matmuls
            h2 = jnp.maximum(
                jnp.dot(hb, uw1a_ref[...], preferred_element_type=jnp.float32)
                + jnp.dot(agg.astype(jnp.bfloat16), uw1b_ref[...],
                          preferred_element_type=jnp.float32)
                + ub1_ref[...], 0.0)
            h = jnp.dot(h2.astype(jnp.bfloat16), uw2_ref[...],
                        preferred_element_type=jnp.float32) + ub2_ref[...]
            if i < n_layers - 1:     # inter-layer F.relu in EEGMPNN.forward
                h = jnp.maximum(h, 0.0)

        # global mean pool (un-normalized 0/1 bf16 pool + f32 1/count) + Linear
        pooled = jnp.dot(p_ref[...], h.astype(jnp.bfloat16),
                         preferred_element_type=jnp.float32) * invc_ref[...]
        out_ref[...] = jnp.dot(pooled, wl_ref[...],
                               preferred_element_type=jnp.float32) + bl_ref[...]

    return kernel


_VMEM = pl.BlockSpec(memory_space=pltpu.MemorySpace.VMEM)


# --------------------------------------------------------------------------
# Graph matrices (padded, 0/1 in bf16; normalization scales in f32)
# --------------------------------------------------------------------------
def build_graph_mats(edge_index, batch, num_nodes, num_graphs, n_pad, e_pad, b_pad):
    src, tgt = edge_index[0], edge_index[1]
    num_edges = src.shape[0]
    g = jnp.zeros((e_pad, n_pad), jnp.float32).at[jnp.arange(num_edges), src].set(1.0)
    s = jnp.zeros((n_pad, e_pad), jnp.float32).at[tgt, jnp.arange(num_edges)].set(1.0)
    inv_deg = 1.0 / jnp.maximum(s.sum(axis=1, keepdims=True), 1.0)      # [n_pad, 1]
    p = jnp.zeros((b_pad, n_pad), jnp.float32).at[batch, jnp.arange(num_nodes)].set(1.0)
    inv_cnt = 1.0 / jnp.maximum(p.sum(axis=1, keepdims=True), 1.0)      # [b_pad, 1]
    return (g.astype(jnp.bfloat16), s.astype(jnp.bfloat16), inv_deg,
            p.astype(jnp.bfloat16), inv_cnt)


# --------------------------------------------------------------------------
# Forward wrapper: pad, cast, single pallas_call
# --------------------------------------------------------------------------
def eeg_mpnn_forward(x, edge_index, batch, edge_attr, params_list, final_params,
                     num_graphs):
    n, _ = x.shape
    e = edge_index.shape[1]
    n_pad = _round_up(n, LANE)      # N is a lane dim of G/P -> pad to 128
    e_pad = _round_up(e, LANE)      # E is a lane dim of S   -> pad to 128
    b_pad = _round_up(num_graphs, SUB)
    c_pad = LANE                    # every channel dim (8/32/16) -> 128 lanes

    g, s, inv_deg, p, inv_cnt = build_graph_mats(
        edge_index, batch, n, num_graphs, n_pad, e_pad, b_pad)

    x_p = _pad2(x, n_pad, c_pad, jnp.bfloat16)
    ea_p = _pad2(edge_attr.reshape(-1, 1), e_pad, 1)   # edge_attr.unsqueeze(1), f32

    args = [x_p, g, s, inv_deg, ea_p, p, inv_cnt]
    for prm in params_list:
        args += [
            _pad2(prm["we"], 1, c_pad),                          # f32 (VPU multiply)
            _pad2(prm["mw1"], c_pad, c_pad, jnp.bfloat16),
            _pad2(prm["mb1"], 1, c_pad),
            _pad2(prm["mw2"], c_pad, c_pad, jnp.bfloat16),
            _pad2(prm["mb2"], 1, c_pad),
            _pad2(prm["uw1a"], c_pad, c_pad, jnp.bfloat16),
            _pad2(prm["uw1b"], c_pad, c_pad, jnp.bfloat16),
            _pad2(prm["ub1"], 1, c_pad),
            _pad2(prm["uw2"], c_pad, c_pad, jnp.bfloat16),
            _pad2(prm["ub2"], 1, c_pad),
        ]
    args += [_pad2(final_params["wl"], c_pad, LANE),             # f32 epilogue
             _pad2(final_params["bl"], 1, LANE)]

    out = pl.pallas_call(
        _make_fused_kernel(len(params_list)),
        out_shape=jax.ShapeDtypeStruct((b_pad, LANE), jnp.float32),
        in_specs=[_VMEM] * len(args),
        out_specs=_VMEM,
    )(*args)
    return out[:num_graphs, :1]


# --------------------------------------------------------------------------
# Deterministic parameter init (weights stored [in, out]; biases [1, out])
# --------------------------------------------------------------------------
def init_linear(key, in_dim, out_dim, bias=True):
    kw, kb = jax.random.split(key)
    bound = 1.0 / float(np.sqrt(in_dim))
    w = jax.random.uniform(kw, (in_dim, out_dim), jnp.float32, -bound, bound)
    b = jax.random.uniform(kb, (1, out_dim), jnp.float32, -bound, bound) if bias else None
    return w, b


def init_mp_params(key, in_ch, out_ch):
    ks = jax.random.split(key, 5)
    mw1, mb1 = init_linear(ks[0], in_ch, out_ch)
    mw2, mb2 = init_linear(ks[1], out_ch, out_ch)
    uw1, ub1 = init_linear(ks[2], in_ch + out_ch, out_ch)
    uw2, ub2 = init_linear(ks[3], out_ch, out_ch)
    we, _ = init_linear(ks[4], 1, out_ch, bias=False)
    return dict(mw1=mw1, mb1=mb1, mw2=mw2, mb2=mb2,
                uw1a=uw1[:in_ch], uw1b=uw1[in_ch:], ub1=ub1,
                uw2=uw2, ub2=ub2, we=we)


# --------------------------------------------------------------------------
# Pure-JAX f32 reference (index-based gather / segment ops)
# --------------------------------------------------------------------------
def reference_forward(x, edge_index, batch, edge_attr, params_list, final_params,
                      num_graphs):
    source, target = edge_index[0], edge_index[1]
    n = x.shape[0]
    ea = edge_attr.reshape(-1, 1)
    h = x
    n_layers = len(params_list)
    for i, prm in enumerate(params_list):
        xs = h[source]
        m = jnp.maximum(xs @ prm["mw1"] + prm["mb1"], 0.0) @ prm["mw2"] + prm["mb2"]
        m = m * (ea @ prm["we"])
        ssum = jax.ops.segment_sum(m, target, num_segments=n)
        cnt = jax.ops.segment_sum(jnp.ones((m.shape[0],), jnp.float32), target,
                                  num_segments=n)
        agg = ssum / jnp.maximum(cnt, 1.0)[:, None]
        cat = jnp.concatenate([h, agg], axis=1)
        uw1 = jnp.concatenate([prm["uw1a"], prm["uw1b"]], axis=0)
        out = jnp.maximum(cat @ uw1 + prm["ub1"], 0.0) @ prm["uw2"] + prm["ub2"]
        h = jnp.maximum(out, 0.0) if i < n_layers - 1 else out
    psum = jax.ops.segment_sum(h, batch, num_segments=num_graphs)
    pcnt = jax.ops.segment_sum(jnp.ones((n,), jnp.float32), batch,
                               num_segments=num_graphs)
    pooled = psum / jnp.maximum(pcnt, 1.0)[:, None]
    return pooled @ final_params["wl"] + final_params["bl"]


# --------------------------------------------------------------------------
if __name__ == "__main__":
    key = jax.random.PRNGKey(0)
    in_channels, hidden_channels, out_channels = 8, 32, 16
    num_mp_layers = 3
    N, E, B = 16, 40, 2   # nodes, edges, graphs in the batch

    k = jax.random.split(key, 6)
    x = jax.random.normal(k[0], (N, in_channels), jnp.float32)
    src = jax.random.randint(k[1], (E,), 0, N)
    tgt = jax.random.randint(k[2], (E,), 0, N)
    edge_index = jnp.stack([src, tgt]).astype(jnp.int32)          # [2, E]
    batch = jnp.concatenate([jnp.zeros(N // 2, jnp.int32),
                             jnp.ones(N - N // 2, jnp.int32)])    # [N]
    edge_attr = jax.random.normal(k[3], (E,), jnp.float32)        # [E] (gets unsqueezed)

    # Layer dims exactly as EEGMPNN.__init__ (num_mp_layers=3 -> 2 MP layers)
    dims = []
    if num_mp_layers == 1:
        dims.append((in_channels, out_channels))
    else:
        dims.append((in_channels, hidden_channels))
        for _ in range(1, num_mp_layers - 2):
            dims.append((hidden_channels, hidden_channels))
        dims.append((hidden_channels, out_channels))

    pk = jax.random.split(k[4], len(dims) + 1)
    params_list = [init_mp_params(pk[i], di, do) for i, (di, do) in enumerate(dims)]
    wl, bl = init_linear(pk[-1], out_channels, 1)
    final_params = dict(wl=wl, bl=bl)

    # TODO(synk): `pooling` helper is undefined in the source; implemented as
    # global mean pooling per graph (pooling_type='mean', the stated default).
    # Note: self.dropout is constructed but never applied in EEGMPNN.forward.
    out = eeg_mpnn_forward(x, edge_index, batch, edge_attr, params_list,
                           final_params, B)
    out = jax.block_until_ready(out)

    ref = reference_forward(x, edge_index, batch, edge_attr, params_list,
                            final_params, B)
    # Kernel runs bf16 MXU operands with f32 accumulation; tolerance relaxed
    # accordingly vs the pure-f32 reference.
    np.testing.assert_allclose(np.asarray(out), np.asarray(ref),
                               rtol=2e-2, atol=2e-2)

    print("KERNEL_OK")
</pallas_src>

<mosaic_0001>
module attributes {stable_mosaic.version = 11 : i64} {
  func.func @kernel(%arg0: memref<128x128xbf16, #tpu.memory_space<vmem>>, %arg1: memref<128x128xbf16, #tpu.memory_space<vmem>>, %arg2: memref<128x128xbf16, #tpu.memory_space<vmem>>, %arg3: memref<128x1xf32, #tpu.memory_space<vmem>>, %arg4: memref<128x1xf32, #tpu.memory_space<vmem>>, %arg5: memref<8x128xbf16, #tpu.memory_space<vmem>>, %arg6: memref<8x1xf32, #tpu.memory_space<vmem>>, %arg7: memref<1x128xf32, #tpu.memory_space<vmem>>, %arg8: memref<128x128xbf16, #tpu.memory_space<vmem>>, %arg9: memref<1x128xf32, #tpu.memory_space<vmem>>, %arg10: memref<128x128xbf16, #tpu.memory_space<vmem>>, %arg11: memref<1x128xf32, #tpu.memory_space<vmem>>, %arg12: memref<128x128xbf16, #tpu.memory_space<vmem>>, %arg13: memref<128x128xbf16, #tpu.memory_space<vmem>>, %arg14: memref<1x128xf32, #tpu.memory_space<vmem>>, %arg15: memref<128x128xbf16, #tpu.memory_space<vmem>>, %arg16: memref<1x128xf32, #tpu.memory_space<vmem>>, %arg17: memref<1x128xf32, #tpu.memory_space<vmem>>, %arg18: memref<128x128xbf16, #tpu.memory_space<vmem>>, %arg19: memref<1x128xf32, #tpu.memory_space<vmem>>, %arg20: memref<128x128xbf16, #tpu.memory_space<vmem>>, %arg21: memref<1x128xf32, #tpu.memory_space<vmem>>, %arg22: memref<128x128xbf16, #tpu.memory_space<vmem>>, %arg23: memref<128x128xbf16, #tpu.memory_space<vmem>>, %arg24: memref<1x128xf32, #tpu.memory_space<vmem>>, %arg25: memref<128x128xbf16, #tpu.memory_space<vmem>>, %arg26: memref<1x128xf32, #tpu.memory_space<vmem>>, %arg27: memref<128x128xf32, #tpu.memory_space<vmem>>, %arg28: memref<1x128xf32, #tpu.memory_space<vmem>>, %arg29: memref<8x128xf32, #tpu.memory_space<vmem>>) attributes {dimension_semantics = [], scalar_prefetch = 0 : i64, scratch_operands = 0 : i64, tpu.core_type = #tpu.core_type<tc>} {
    %c0 = arith.constant 0 : index
    %c0_0 = arith.constant 0 : index
    %0 = vector.load %arg1[%c0, %c0_0] : memref<128x128xbf16, #tpu.memory_space<vmem>>, vector<128x128xbf16>
    %c0_1 = arith.constant 0 : index
    %c0_2 = arith.constant 0 : index
    %1 = vector.load %arg2[%c0_1, %c0_2] : memref<128x128xbf16, #tpu.memory_space<vmem>>, vector<128x128xbf16>
    %c0_3 = arith.constant 0 : index
    %c0_4 = arith.constant 0 : index
    %2 = vector.load %arg3[%c0_3, %c0_4] : memref<128x1xf32, #tpu.memory_space<vmem>>, vector<128x1xf32>
    %c0_5 = arith.constant 0 : index
    %c0_6 = arith.constant 0 : index
    %3 = vector.load %arg4[%c0_5, %c0_6] : memref<128x1xf32, #tpu.memory_space<vmem>>, vector<128x1xf32>
    %c0_7 = arith.constant 0 : index
    %c0_8 = arith.constant 0 : index
    %4 = vector.load %arg0[%c0_7, %c0_8] : memref<128x128xbf16, #tpu.memory_space<vmem>>, vector<128x128xbf16>
    %5 = arith.extf %4 : vector<128x128xbf16> to vector<128x128xf32>
    %6 = arith.truncf %5 : vector<128x128xf32> to vector<128x128xbf16>
    %cst = arith.constant dense<0.000000e+00> : vector<128x128xf32>
    %7 = tpu.matmul %0, %6, %cst {dimension_numbers = #tpu.dot_dimension_numbers<[1], [0], [0], [1], [0, 0, 1, 1], [], []>} : vector<128x128xbf16>, vector<128x128xbf16>, vector<128x128xf32> -> vector<128x128xf32>
    %8 = arith.truncf %7 : vector<128x128xf32> to vector<128x128xbf16>
    %c0_9 = arith.constant 0 : index
    %c0_10 = arith.constant 0 : index
    %9 = vector.load %arg8[%c0_9, %c0_10] : memref<128x128xbf16, #tpu.memory_space<vmem>>, vector<128x128xbf16>
    %cst_11 = arith.constant dense<0.000000e+00> : vector<128x128xf32>
    %10 = tpu.matmul %8, %9, %cst_11 {dimension_numbers = #tpu.dot_dimension_numbers<[1], [0], [0], [1], [0, 0, 1, 1], [], []>} : vector<128x128xbf16>, vector<128x128xbf16>, vector<128x128xf32> -> vector<128x128xf32>
    %c0_12 = arith.constant 0 : index
    %c0_13 = arith.constant 0 : index
    %11 = vector.load %arg9[%c0_12, %c0_13] : memref<1x128xf32, #tpu.memory_space<vmem>>, vector<1x128xf32>
    %12 = vector.broadcast %11 : vector<1x128xf32> to vector<128x128xf32>
    %13 = arith.addf %10, %12 : vector<128x128xf32>
    %cst_14 = arith.constant 0.000000e+00 : f32
    %14 = vector.broadcast %cst_14 : f32 to vector<128x128xf32>
    %15 = arith.maximumf %13, %14 : vector<128x128xf32>
    %16 = arith.truncf %15 : vector<128x128xf32> to vector<128x128xbf16>
    %c0_15 = arith.constant 0 : index
    %c0_16 = arith.constant 0 : index
    %17 = vector.load %arg10[%c0_15, %c0_16] : memref<128x128xbf16, #tpu.memory_space<vmem>>, vector<128x128xbf16>
    %cst_17 = arith.constant dense<0.000000e+00> : vector<128x128xf32>
    %18 = tpu.matmul %16, %17, %cst_17 {dimension_numbers = #tpu.dot_dimension_numbers<[1], [0], [0], [1], [0, 0, 1, 1], [], []>} : vector<128x128xbf16>, vector<128x128xbf16>, vector<128x128xf32> -> vector<128x128xf32>
    %c0_18 = arith.constant 0 : index
    %c0_19 = arith.constant 0 : index
    %19 = vector.load %arg11[%c0_18, %c0_19] : memref<1x128xf32, #tpu.memory_space<vmem>>, vector<1x128xf32>
    %20 = vector.broadcast %19 : vector<1x128xf32> to vector<128x128xf32>
    %21 = arith.addf %18, %20 : vector<128x128xf32>
    %c0_20 = arith.constant 0 : index
    %c0_21 = arith.constant 0 : index
    %22 = vector.load %arg7[%c0_20, %c0_21] : memref<1x128xf32, #tpu.memory_space<vmem>>, vector<1x128xf32>
    %23 = vector.broadcast %3 : vector<128x1xf32> to vector<128x128xf32>
    %24 = vector.broadcast %22 : vector<1x128xf32> to vector<128x128xf32>
    %25 = arith.mulf %23, %24 : vector<128x128xf32>
    %26 = arith.mulf %21, %25 : vector<128x128xf32>
    %27 = arith.truncf %26 : vector<128x128xf32> to vector<128x128xbf16>
    %cst_22 = arith.constant dense<0.000000e+00> : vector<128x128xf32>
    %28 = tpu.matmul %1, %27, %cst_22 {dimension_numbers = #tpu.dot_dimension_numbers<[1], [0], [0], [1], [0, 0, 1, 1], [], []>} : vector<128x128xbf16>, vector<128x128xbf16>, vector<128x128xf32> -> vector<128x128xf32>
    %29 = vector.broadcast %2 : vector<128x1xf32> to vector<128x128xf32>
    %30 = arith.mulf %28, %29 : vector<128x128xf32>
    %c0_23 = arith.constant 0 : index
    %c0_24 = arith.constant 0 : index
    %31 = vector.load %arg12[%c0_23, %c0_24] : memref<128x128xbf16, #tpu.memory_space<vmem>>, vector<128x128xbf16>
    %cst_25 = arith.constant dense<0.000000e+00> : vector<128x128xf32>
    %32 = tpu.matmul %6, %31, %cst_25 {dimension_numbers = #tpu.dot_dimension_numbers<[1], [0], [0], [1], [0, 0, 1, 1], [], []>} : vector<128x128xbf16>, vector<128x128xbf16>, vector<128x128xf32> -> vector<128x128xf32>
    %33 = arith.truncf %30 : vector<128x128xf32> to vector<128x128xbf16>
    %c0_26 = arith.constant 0 : index
    %c0_27 = arith.constant 0 : index
    %34 = vector.load %arg13[%c0_26, %c0_27] : memref<128x128xbf16, #tpu.memory_space<vmem>>, vector<128x128xbf16>
    %cst_28 = arith.constant dense<0.000000e+00> : vector<128x128xf32>
    %35 = tpu.matmul %33, %34, %cst_28 {dimension_numbers = #tpu.dot_dimension_numbers<[1], [0], [0], [1], [0, 0, 1, 1], [], []>} : vector<128x128xbf16>, vector<128x128xbf16>, vector<128x128xf32> -> vector<128x128xf32>
    %36 = arith.addf %32, %35 : vector<128x128xf32>
    %c0_29 = arith.constant 0 : index
    %c0_30 = arith.constant 0 : index
    %37 = vector.load %arg14[%c0_29, %c0_30] : memref<1x128xf32, #tpu.memory_space<vmem>>, vector<1x128xf32>
    %38 = vector.broadcast %37 : vector<1x128xf32> to vector<128x128xf32>
    %39 = arith.addf %36, %38 : vector<128x128xf32>
    %cst_31 = arith.constant 0.000000e+00 : f32
    %40 = vector.broadcast %cst_31 : f32 to vector<128x128xf32>
    %41 = arith.maximumf %39, %40 : vector<128x128xf32>
    %42 = arith.truncf %41 : vector<128x128xf32> to vector<128x128xbf16>
    %c0_32 = arith.constant 0 : index
    %c0_33 = arith.constant 0 : index
    %43 = vector.load %arg15[%c0_32, %c0_33] : memref<128x128xbf16, #tpu.memory_space<vmem>>, vector<128x128xbf16>
    %cst_34 = arith.constant dense<0.000000e+00> : vector<128x128xf32>
    %44 = tpu.matmul %42, %43, %cst_34 {dimension_numbers = #tpu.dot_dimension_numbers<[1], [0], [0], [1], [0, 0, 1, 1], [], []>} : vector<128x128xbf16>, vector<128x128xbf16>, vector<128x128xf32> -> vector<128x128xf32>
    %c0_35 = arith.constant 0 : index
    %c0_36 = arith.constant 0 : index
    %45 = vector.load %arg16[%c0_35, %c0_36] : memref<1x128xf32, #tpu.memory_space<vmem>>, vector<1x128xf32>
    %46 = vector.broadcast %45 : vector<1x128xf32> to vector<128x128xf32>
    %47 = arith.addf %44, %46 : vector<128x128xf32>
    %cst_37 = arith.constant 0.000000e+00 : f32
    %48 = vector.broadcast %cst_37 : f32 to vector<128x128xf32>
    %49 = arith.maximumf %47, %48 : vector<128x128xf32>
    %50 = arith.truncf %49 : vector<128x128xf32> to vector<128x128xbf16>
    %cst_38 = arith.constant dense<0.000000e+00> : vector<128x128xf32>
    %51 = tpu.matmul %0, %50, %cst_38 {dimension_numbers = #tpu.dot_dimension_numbers<[1], [0], [0], [1], [0, 0, 1, 1], [], []>} : vector<128x128xbf16>, vector<128x128xbf16>, vector<128x128xf32> -> vector<128x128xf32>
    %52 = arith.truncf %51 : vector<128x128xf32> to vector<128x128xbf16>
    %c0_39 = arith.constant 0 : index
    %c0_40 = arith.constant 0 : index
    %53 = vector.load %arg18[%c0_39, %c0_40] : memref<128x128xbf16, #tpu.memory_space<vmem>>, vector<128x128xbf16>
    %cst_41 = arith.constant dense<0.000000e+00> : vector<128x128xf32>
    %54 = tpu.matmul %52, %53, %cst_41 {dimension_numbers = #tpu.dot_dimension_numbers<[1], [0], [0], [1], [0, 0, 1, 1], [], []>} : vector<128x128xbf16>, vector<128x128xbf16>, vector<128x128xf32> -> vector<128x128xf32>
    %c0_42 = arith.constant 0 : index
    %c0_43 = arith.constant 0 : index
    %55 = vector.load %arg19[%c0_42, %c0_43] : memref<1x128xf32, #tpu.memory_space<vmem>>, vector<1x128xf32>
    %56 = vector.broadcast %55 : vector<1x128xf32> to vector<128x128xf32>
    %57 = arith.addf %54, %56 : vector<128x128xf32>
    %cst_44 = arith.constant 0.000000e+00 : f32
    %58 = vector.broadcast %cst_44 : f32 to vector<128x128xf32>
    %59 = arith.maximumf %57, %58 : vector<128x128xf32>
    %60 = arith.truncf %59 : vector<128x128xf32> to vector<128x128xbf16>
    %c0_45 = arith.constant 0 : index
    %c0_46 = arith.constant 0 : index
    %61 = vector.load %arg20[%c0_45, %c0_46] : memref<128x128xbf16, #tpu.memory_space<vmem>>, vector<128x128xbf16>
    %cst_47 = arith.constant dense<0.000000e+00> : vector<128x128xf32>
    %62 = tpu.matmul %60, %61, %cst_47 {dimension_numbers = #tpu.dot_dimension_numbers<[1], [0], [0], [1], [0, 0, 1, 1], [], []>} : vector<128x128xbf16>, vector<128x128xbf16>, vector<128x128xf32> -> vector<128x128xf32>
    %c0_48 = arith.constant 0 : index
    %c0_49 = arith.constant 0 : index
    %63 = vector.load %arg21[%c0_48, %c0_49] : memref<1x128xf32, #tpu.memory_space<vmem>>, vector<1x128xf32>
    %64 = vector.broadcast %63 : vector<1x128xf32> to vector<128x128xf32>
    %65 = arith.addf %62, %64 : vector<128x128xf32>
    %c0_50 = arith.constant 0 : index
    %c0_51 = arith.constant 0 : index
    %66 = vector.load %arg17[%c0_50, %c0_51] : memref<1x128xf32, #tpu.memory_space<vmem>>, vector<1x128xf32>
    %67 = vector.broadcast %3 : vector<128x1xf32> to vector<128x128xf32>
    %68 = vector.broadcast %66 : vector<1x128xf32> to vector<128x128xf32>
    %69 = arith.mulf %67, %68 : vector<128x128xf32>
    %70 = arith.mulf %65, %69 : vector<128x128xf32>
    %71 = arith.truncf %70 : vector<128x128xf32> to vector<128x128xbf16>
    %cst_52 = arith.constant dense<0.000000e+00> : vector<128x128xf32>
    %72 = tpu.matmul %1, %71, %cst_52 {dimension_numbers = #tpu.dot_dimension_numbers<[1], [0], [0], [1], [0, 0, 1, 1], [], []>} : vector<128x128xbf16>, vector<128x128xbf16>, vector<128x128xf32> -> vector<128x128xf32>
    %73 = vector.broadcast %2 : vector<128x1xf32> to vector<128x128xf32>
    %74 = arith.mulf %72, %73 : vector<128x128xf32>
    %c0_53 = arith.constant 0 : index
    %c0_54 = arith.constant 0 : index
    %75 = vector.load %arg22[%c0_53, %c0_54] : memref<128x128xbf16, #tpu.memory_space<vmem>>, vector<128x128xbf16>
    %cst_55 = arith.constant dense<0.000000e+00> : vector<128x128xf32>
    %76 = tpu.matmul %50, %75, %cst_55 {dimension_numbers = #tpu.dot_dimension_numbers<[1], [0], [0], [1], [0, 0, 1, 1], [], []>} : vector<128x128xbf16>, vector<128x128xbf16>, vector<128x128xf32> -> vector<128x128xf32>
    %77 = arith.truncf %74 : vector<128x128xf32> to vector<128x128xbf16>
    %c0_56 = arith.constant 0 : index
    %c0_57 = arith.constant 0 : index
    %78 = vector.load %arg23[%c0_56, %c0_57] : memref<128x128xbf16, #tpu.memory_space<vmem>>, vector<128x128xbf16>
    %cst_58 = arith.constant dense<0.000000e+00> : vector<128x128xf32>
    %79 = tpu.matmul %77, %78, %cst_58 {dimension_numbers = #tpu.dot_dimension_numbers<[1], [0], [0], [1], [0, 0, 1, 1], [], []>} : vector<128x128xbf16>, vector<128x128xbf16>, vector<128x128xf32> -> vector<128x128xf32>
    %80 = arith.addf %76, %79 : vector<128x128xf32>
    %c0_59 = arith.constant 0 : index
    %c0_60 = arith.constant 0 : index
    %81 = vector.load %arg24[%c0_59, %c0_60] : memref<1x128xf32, #tpu.memory_space<vmem>>, vector<1x128xf32>
    %82 = vector.broadcast %81 : vector<1x128xf32> to vector<128x128xf32>
    %83 = arith.addf %80, %82 : vector<128x128xf32>
    %cst_61 = arith.constant 0.000000e+00 : f32
    %84 = vector.broadcast %cst_61 : f32 to vector<128x128xf32>
    %85 = arith.maximumf %83, %84 : vector<128x128xf32>
    %86 = arith.truncf %85 : vector<128x128xf32> to vector<128x128xbf16>
    %c0_62 = arith.constant 0 : index
    %c0_63 = arith.constant 0 : index
    %87 = vector.load %arg25[%c0_62, %c0_63] : memref<128x128xbf16, #tpu.memory_space<vmem>>, vector<128x128xbf16>
    %cst_64 = arith.constant dense<0.000000e+00> : vector<128x128xf32>
    %88 = tpu.matmul %86, %87, %cst_64 {dimension_numbers = #tpu.dot_dimension_numbers<[1], [0], [0], [1], [0, 0, 1, 1], [], []>} : vector<128x128xbf16>, vector<128x128xbf16>, vector<128x128xf32> -> vector<128x128xf32>
    %c0_65 = arith.constant 0 : index
    %c0_66 = arith.constant 0 : index
    %89 = vector.load %arg26[%c0_65, %c0_66] : memref<1x128xf32, #tpu.memory_space<vmem>>, vector<1x128xf32>
    %90 = vector.broadcast %89 : vector<1x128xf32> to vector<128x128xf32>
    %91 = arith.addf %88, %90 : vector<128x128xf32>
    %c0_67 = arith.constant 0 : index
    %c0_68 = arith.constant 0 : index
    %92 = vector.load %arg5[%c0_67, %c0_68] : memref<8x128xbf16, #tpu.memory_space<vmem>>, vector<8x128xbf16>
    %93 = arith.truncf %91 : vector<128x128xf32> to vector<128x128xbf16>
    %cst_69 = arith.constant dense<0.000000e+00> : vector<8x128xf32>
    %94 = tpu.matmul %92, %93, %cst_69 {dimension_numbers = #tpu.dot_dimension_numbers<[1], [0], [0], [1], [0, 0, 1, 1], [], []>} : vector<8x128xbf16>, vector<128x128xbf16>, vector<8x128xf32> -> vector<8x128xf32>
    %c0_70 = arith.constant 0 : index
    %c0_71 = arith.constant 0 : index
    %95 = vector.load %arg6[%c0_70, %c0_71] : memref<8x1xf32, #tpu.memory_space<vmem>>, vector<8x1xf32>
    %96 = vector.broadcast %95 : vector<8x1xf32> to vector<8x128xf32>
    %97 = arith.mulf %94, %96 : vector<8x128xf32>
    %c0_72 = arith.constant 0 : index
    %c0_73 = arith.constant 0 : index
    %98 = vector.load %arg27[%c0_72, %c0_73] : memref<128x128xf32, #tpu.memory_space<vmem>>, vector<128x128xf32>
    %cst_74 = arith.constant dense<0.000000e+00> : vector<8x128xf32>
    %99 = tpu.matmul %97, %98, %cst_74 {dimension_numbers = #tpu.dot_dimension_numbers<[1], [0], [0], [1], [0, 0, 1, 1], [], []>} : vector<8x128xf32>, vector<128x128xf32>, vector<8x128xf32> -> vector<8x128xf32>
    %c0_75 = arith.constant 0 : index
    %c0_76 = arith.constant 0 : index
    %100 = vector.load %arg28[%c0_75, %c0_76] : memref<1x128xf32, #tpu.memory_space<vmem>>, vector<1x128xf32>
    %101 = vector.broadcast %100 : vector<1x128xf32> to vector<8x128xf32>
    %102 = arith.addf %99, %101 : vector<8x128xf32>
    %c0_77 = arith.constant 0 : index
    %c0_78 = arith.constant 0 : index
    %103 = vector.load %arg29[%c0_77, %c0_78] : memref<8x128xf32, #tpu.memory_space<vmem>>, vector<8x128xf32>
    tpu.vector_store %arg29[%c0_77, %c0_78], %102 {strides = array<i32>} : memref<8x128xf32, #tpu.memory_space<vmem>>, vector<8x128xf32>,
    return
  }
}

</mosaic_0001>

<bundles_post_ra>
// kernel: tpu_custom_call.1
= control target key start
LH: loop header
LB: loop body
LE: loop exit
PB: predicated region body
PF: predicated region fallthrough
CT: control target
= control target key end

     0   :  { %s4706_s6 = smov 1   ;;  %s4707_s10 = smov 2   ;;  %s5352_s0 = inlined_call_operand.smem [shape: u32[30], index: -1, kind: input, shape index: {}] }
   0x1   :  { %s4764_s5 = sld [smem:[%s5352_s0]]   ;;  %s4708_s14 = smov 3  }
   0x2   :  { %s4769_s9 = sld [smem:[%s5352_s0 + %s4706_s6]]   ;;  %s4709_s18 = smov 4  }
   0x3   :  { %s4774_s13 = sld [smem:[%s5352_s0 + %s4707_s10]]   ;;  %s4710_s22 = smov 5  }
   0x4   :  { %s4779_s17 = sld [smem:[%s5352_s0 + %s4708_s14]]   ;;  %s4711_s26 = smov 6  }
   0x5   :  { %s4784_s21 = sld [smem:[%s5352_s0 + %s4709_s18]]   ;;  %s4712_s30 = smov 7  }
   0x6   :  { %s4789_s25 = sld [smem:[%s5352_s0 + %s4710_s22]]   ;;  %s4713_s4 = smov 8  }
   0x7   :  { %5358 = sst [smem:[#allocation35_spill]] %s4764_s5  ;;  %s4714_s10 = smov 9  }
   0x8   :  { %5359 = sst [smem:[#allocation36_spill]] %s4769_s9  ;;  %s4715_s15 = smov 10  }
   0x9   :  { %s4794_s29 = sld [smem:[%s5352_s0 + %s4711_s26]]   ;;  %s4716_s20 = smov 11  }
   0xa   :  { %5360 = sst [smem:[#allocation37_spill]] %s4779_s17  ;;  %s4717_s26 = smov 12  }
   0xb   :  { %5361 = sst [smem:[#allocation38_spill]] %s4784_s21  ;;  %s4718_s1 = smov 13  }
   0xc   :  { %s4799_s3 = sld [smem:[%s5352_s0 + %s4712_s30]]   ;;  %s4719_s7 = smov 14  }
   0xd   :  { %s4804_s8 = sld [smem:[%s5352_s0 + %s4713_s4]]   ;;  %s4721_s22 = smov 16  }
   0xe   :  { %s4809_s14 = sld [smem:[%s5352_s0 + %s4714_s10]]   ;;  %s4722_s28 = smov 17  }
   0xf   :  { %5362 = sst [smem:[#allocation39_spill]] %s4794_s29 }
  0x10   :  { %s4814_s19 = sld [smem:[%s5352_s0 + %s4715_s15]]   ;;  %s4720_s15 = smov 15  }
  0x11   :  { %s4819_s24 = sld [smem:[%s5352_s0 + %s4716_s20]]  }
  0x12   :  { %5363 = sst [smem:[#allocation40_spill]] %s4799_s3 }
  0x13   :  { %s4824_s30 = sld [smem:[%s5352_s0 + %s4717_s26]]  }
  0x14   :  { %s4829_s6 = sld [smem:[%s5352_s0 + %s4718_s1]]  }
  0x15   :  { %s4834_s12 = sld [smem:[%s5352_s0 + %s4719_s7]]   ;;  %s4723_s7 = smov 18  }
  0x16   :  { %s4839_s20 = sld [smem:[%s5352_s0 + %s4720_s15]]   ;;  %s4724_s15 = smov 19  }
  0x17   :  { %s4844_s27 = sld [smem:[%s5352_s0 + %s4721_s22]]   ;;  %s4725_s22 = smov 20  }
  0x18   :  { %s4849_s4 = sld [smem:[%s5352_s0 + %s4722_s28]]   ;;  %s4726_s28 = smov 21  }
  0x19   :  { %s4854_s3 = sld [smem:[%s5352_s0 + %s4723_s7]]   ;;  %s4727_s7 = smov 22  }
  0x1a   :  { %s4874_s29 = sld [smem:[%s5352_s0 + %s4727_s7]]   ;;  %s4731_s7 = smov 26  }
  0x1b   :  { %s4894_s21 = sld [smem:[%s5352_s0 + %s4731_s7]]  }
  0x1c   :  { %5364 = sst [smem:[#allocation41_spill]] %s4839_s20 }
  0x1d   :  { %5365 = sst [smem:[#allocation42_spill]] %s4844_s27 }
  0x1e   :  { %5366 = sst [smem:[#allocation43_spill]] %s4849_s4 }
  0x1f   :  { %s4859_s20 = sld [smem:[%s5352_s0 + %s4724_s15]]   ;;  %s4728_s15 = smov 23  }
  0x20   :  { %s4864_s27 = sld [smem:[%s5352_s0 + %s4725_s22]]   ;;  %s4729_s22 = smov 24  }
  0x21   :  { %s4869_s4 = sld [smem:[%s5352_s0 + %s4726_s28]]   ;;  %s4730_s28 = smov 25  }
  0x22   :  { %s4884_s17 = sld [smem:[%s5352_s0 + %s4729_s22]]   ;;  %s4733_s22 = smov 28  }
  0x25   :  { %5367 = sst [smem:[#allocation44_spill]] %s4859_s20 }
  0x26   :  { %s4879_s20 = sld [smem:[%s5352_s0 + %s4728_s15]]   ;;  %s4732_s15 = smov 27  }
  0x27   :  { %5368 = sst [smem:[#allocation45_spill]] %s4869_s4 }
  0x28   :  { %5369 = sst [smem:[#allocation46_spill]] %s4884_s17 }
  0x29   :  { %s4889_s4 = sld [smem:[%s5352_s0 + %s4730_s28]]   ;;  %s4734_s28 = smov 29  }
  0x2a   :  { %s4899_s9 = sld [smem:[%s5352_s0 + %s4732_s15]]  }
  0x2b   :  { %s4904_s17 = sld [smem:[%s5352_s0 + %s4733_s22]]  }
  0x2c   :  { %s4909_s5 = sld [smem:[%s5352_s0 + %s4734_s28]]  }
  0x2d   :  { %64 = vsyncpa [#allocation3], 0 }
  0x2e   :  { %65 = vsyncpa [#allocation6], 0 }
  0x2f   :  { %66 = vsyncpa [#allocation9], 0 }
  0x30   :  { %67 = vsyncpa [#allocation12], 0 }
  0x31   :  { %68 = vsyncpa [#allocation15], 0 }
  0x32   :  { %69 = vsyncpa [#allocation18], 0 }
  0x33   :  { %70 = vsyncpa [#allocation21], 0 }
  0x34   :  { %71 = vsyncpa [#allocation24], 0 }
  0x35   :  { %72 = vsyncpa [#allocation4], 0  ;;  %s4735_s7 = smov [#allocation5]   ;;  %s4736_s11 = smov [#allocation8]  }
  0x36   :  { %s99_s10 = sshll.u32 %s4735_s7, 4  ;;  %s125_s15 = sshll.u32 %s4736_s11, 4  ;;  %s100_s10 = int_to_ptr.vmem [resolvable:$true] %s99_s10  ;;  %s126_s15 = int_to_ptr.vmem [resolvable:$true] %s125_s15 }
  0x37   :  { %s4358_s0 = scalar_lea.hbm %s4789_s25, 64 }
  0x38   :  { %p4359_p0 = scmp.ne.s32.totalorder %s4789_s25, %s4358_s0  ;;  %p4362_p1 = scmp.lt.u32.totalorder %s4358_s0, %s4789_s25 }
  0x3a   :  { %p4364_p2 = pnand %p4362_p1, %p4359_p0 }
  0x3c   :  { %4367 = shalt.err (!%p4364_p2)
}
  0x3d   :  { %s4368_s16 = scalar_lea.vmem %s100_s10, 64  ;;  %p4373_p4 = scmp.lt.s32.totalorder %s100_s10, %s100_s10 }
  0x3e   :  { %p4369_p3 = scmp.ne.s32.totalorder %s100_s10, %s4368_s16  ;;  %p4374_p5 = scmp.lt.s32.totalorder %s4368_s16, %s4368_s16 }
  0x40   :  { %p4375_p6 = por %p4374_p5, %p4373_p4 }
  0x42   :  { %p4376_p7 = pnand %p4375_p6, %p4369_p3 }
  0x44   :  { %4379 = shalt.err (!%p4376_p7)
}
  0x45   :  { %102 = dma.hbm_to_vmem [thread:$0]  %s4789_s25, 64, %s100_s10, [#allocation6]  }
  0x46   :  { %s4380_s18 = scalar_lea.hbm %s4809_s14, 16 }
  0x47   :  { %p4381_p8 = scmp.ne.s32.totalorder %s4809_s14, %s4380_s18  ;;  %p4384_p9 = scmp.lt.u32.totalorder %s4380_s18, %s4809_s14 }
  0x49   :  { %p4386_p10 = pnand %p4384_p9, %p4381_p8 }
  0x4b   :  { %4389 = shalt.err (!%p4386_p10)
}
  0x4c   :  { %s4390_s22 = scalar_lea.vmem %s126_s15, 16  ;;  %s4394_s23 = scalar_lea.vmem %s126_s15, 32 }
  0x4d   :  { %p4391_p11 = scmp.ne.s32.totalorder %s126_s15, %s4390_s22  ;;  %p4395_p12 = scmp.lt.s32.totalorder %s126_s15, %s126_s15 }
  0x4e   :  { %p4396_p13 = scmp.lt.s32.totalorder %s4394_s23, %s4390_s22 }
  0x50   :  { %p4397_p0 = por %p4396_p13, %p4395_p12 }
  0x52   :  { %p4398_p1 = pnand %p4397_p0, %p4391_p11 }
  0x54   :  { %4401 = shalt.err (!%p4398_p1)
}
  0x55   :  { %128 = dma.hbm_to_vmem [thread:$0]  %s4809_s14, 16, %s126_s15, [#allocation9]  }
  0x56   :  { %s4737_s26 = smov [#allocation11]   ;;  %s4402_s28 = scalar_lea.hbm %s4819_s24, 16 }
  0x57   :  { %s147_s25 = sshll.u32 %s4737_s26, 4  ;;  %p4403_p2 = scmp.ne.s32.totalorder %s4819_s24, %s4402_s28  ;;  %s148_s25 = int_to_ptr.vmem [resolvable:$true] %s147_s25 }
  0x58   :  { %p4406_p3 = scmp.lt.u32.totalorder %s4402_s28, %s4819_s24 }
  0x5a   :  { %p4408_p4 = pnand %p4406_p3, %p4403_p2 }
  0x5c   :  { %4411 = shalt.err (!%p4408_p4)
}
  0x5d   :  { %s4412_s1 = scalar_lea.vmem %s148_s25, 16  ;;  %s4416_s2 = scalar_lea.vmem %s148_s25, 32 }
  0x5e   :  { %p4413_p5 = scmp.ne.s32.totalorder %s148_s25, %s4412_s1  ;;  %p4417_p6 = scmp.lt.s32.totalorder %s148_s25, %s148_s25 }
  0x5f   :  { %p4418_p7 = scmp.lt.s32.totalorder %s4416_s2, %s4412_s1 }
  0x61   :  { %p4419_p8 = por %p4418_p7, %p4417_p6 }
  0x63   :  { %p4420_p9 = pnand %p4419_p8, %p4413_p5 }
  0x65   :  { %4423 = shalt.err (!%p4420_p9)
}
  0x66   :  { %150 = dma.hbm_to_vmem [thread:$0]  %s4819_s24, 16, %s148_s25, [#allocation12]  }
  0x67   :  { %s4738_s14 = smov [#allocation14]   ;;  %s4739_s10 = smov [#allocation17]  }
  0x68   :  { %s168_s7 = sshll.u32 %s4738_s14, 4  ;;  %s196_s11 = sshll.u32 %s4739_s10, 4  ;;  %s169_s7 = int_to_ptr.vmem [resolvable:$true] %s168_s7  ;;  %s197_s11 = int_to_ptr.vmem [resolvable:$true] %s196_s11 }
  0x69   :  { %s4424_s15 = scalar_lea.hbm %s4829_s6, 1024 }
  0x6a   :  { %p4425_p10 = scmp.ne.s32.totalorder %s4829_s6, %s4424_s15  ;;  %p4428_p11 = scmp.lt.u32.totalorder %s4424_s15, %s4829_s6 }
  0x6c   :  { %p4430_p12 = pnand %p4428_p11, %p4425_p10 }
  0x6e   :  { %4433 = shalt.err (!%p4430_p12)
}
  0x6f   :  { %s4434_s0 = scalar_lea.vmem %s169_s7, 1024  ;;  %p4439_p0 = scmp.lt.s32.totalorder %s169_s7, %s169_s7 }
  0x70   :  { %p4435_p13 = scmp.ne.s32.totalorder %s169_s7, %s4434_s0  ;;  %p4440_p1 = scmp.lt.s32.totalorder %s4434_s0, %s4434_s0 }
  0x72   :  { %p4441_p2 = por %p4440_p1, %p4439_p0 }
  0x74   :  { %p4442_p3 = pnand %p4441_p2, %p4435_p13 }
  0x76   :  { %4445 = shalt.err (!%p4442_p3)
}
  0x77   :  { %s4740_s16 = smov 64   ;;  %s4741_s24 = smov 4  }
  0x78   :  { %174 = dma.hbm_to_vmem [thread:$0]  %s4829_s6, 1024, %s169_s7, [#allocation15], %s4740_s16, %s4740_s16, %s4741_s24  }
  0x79   :  { %s4446_s18 = scalar_lea.hbm %s4854_s3, 1024 }
  0x7a   :  { %p4447_p4 = scmp.ne.s32.totalorder %s4854_s3, %s4446_s18  ;;  %p4450_p5 = scmp.lt.u32.totalorder %s4446_s18, %s4854_s3 }
  0x7c   :  { %p4452_p6 = pnand %p4450_p5, %p4447_p4 }
  0x7e   :  { %4455 = shalt.err (!%p4452_p6)
}
  0x7f   :  { %s4456_s22 = scalar_lea.vmem %s197_s11, 1024  ;;  %p4461_p8 = scmp.lt.s32.totalorder %s197_s11, %s197_s11 }
  0x80   :  { %p4457_p7 = scmp.ne.s32.totalorder %s197_s11, %s4456_s22  ;;  %p4462_p9 = scmp.lt.s32.totalorder %s4456_s22, %s4456_s22 }
  0x82   :  { %p4463_p10 = por %p4462_p9, %p4461_p8 }
  0x84   :  { %p4464_p11 = pnand %p4463_p10, %p4457_p7 }
  0x86   :  { %4467 = shalt.err (!%p4464_p11)
}
  0x87   :  { %202 = dma.hbm_to_vmem [thread:$0]  %s4854_s3, 1024, %s197_s11, [#allocation18], %s4740_s16, %s4740_s16, %s4741_s24  }
  0x88   :  { %s4742_s6 = smov [#allocation20]   ;;  %s4743_s26 = smov [#allocation2]  }
  0x89   :  { %s224_s23 = sshll.u32 %s4742_s6, 4  ;;  %s82_s25 = sshll.u32 %s4743_s26, 4  ;;  %s225_s23 = int_to_ptr.vmem [resolvable:$true] %s224_s23  ;;  %s83_s25 = int_to_ptr.vmem [resolvable:$true] %s82_s25 }
  0x8a   :  { %s4468_s28 = scalar_lea.hbm %s4874_s29, 1024 }
  0x8b   :  { %p4469_p12 = scmp.ne.s32.totalorder %s4874_s29, %s4468_s28  ;;  %p4472_p13 = scmp.lt.u32.totalorder %s4468_s28, %s4874_s29 }
  0x8d   :  { %p4474_p0 = pnand %p4472_p13, %p4469_p12 }
  0x8f   :  { %4477 = shalt.err (!%p4474_p0)
}
  0x90   :  { %s4478_s1 = scalar_lea.vmem %s225_s23, 1024  ;;  %p4483_p2 = scmp.lt.s32.totalorder %s225_s23, %s225_s23 }
  0x91   :  { %p4479_p1 = scmp.ne.s32.totalorder %s225_s23, %s4478_s1  ;;  %p4484_p3 = scmp.lt.s32.totalorder %s4478_s1, %s4478_s1 }
  0x93   :  { %p4485_p4 = por %p4484_p3, %p4483_p2 }
  0x95   :  { %p4486_p5 = pnand %p4485_p4, %p4479_p1 }
  0x97   :  { %4489 = shalt.err (!%p4486_p5)
}
  0x98   :  { %230 = dma.hbm_to_vmem [thread:$0]  %s4874_s29, 1024, %s225_s23, [#allocation21], %s4740_s16, %s4740_s16, %s4741_s24  }
  0x99   :  { %s4490_s3 = scalar_lea.hbm %s4774_s13, 1024 }
  0x9a   :  { %p4491_p6 = scmp.ne.s32.totalorder %s4774_s13, %s4490_s3  ;;  %p4494_p7 = scmp.lt.u32.totalorder %s4490_s3, %s4774_s13 }
  0x9c   :  { %p4496_p8 = pnand %p4494_p7, %p4491_p6 }
  0x9e   :  { %4499 = shalt.err (!%p4496_p8)
}
  0x9f   :  { %s4500_s2 = scalar_lea.vmem %s83_s25, 1024  ;;  %p4505_p10 = scmp.lt.s32.totalorder %s83_s25, %s83_s25 }
  0xa0   :  { %p4501_p9 = scmp.ne.s32.totalorder %s83_s25, %s4500_s2  ;;  %p4506_p11 = scmp.lt.s32.totalorder %s4500_s2, %s4500_s2 }
  0xa2   :  { %p4507_p12 = por %p4506_p11, %p4505_p10 }
  0xa4   :  { %p4508_p13 = pnand %p4507_p12, %p4501_p9 }
  0xa6   :  { %4511 = shalt.err (!%p4508_p13)
}
  0xa7   :  { %88 = dma.hbm_to_vmem [thread:$0]  %s4774_s13, 1024, %s83_s25, [#allocation3], %s4740_s16, %s4740_s16, %s4741_s24  }
  0xa8   :  { %s4744_s29 = smov [#allocation7]   ;;  %s4745_s7 = smov [#allocation10]  }
  0xa9   :  { %s112_s14 = sshll.u32 %s4744_s29, 4  ;;  %s134_s10 = sshll.u32 %s4745_s7, 4  ;;  %s113_s14 = int_to_ptr.vmem [resolvable:$true] %s112_s14  ;;  %s135_s10 = int_to_ptr.vmem [resolvable:$true] %s134_s10 }
  0xaa   :  { %s4512_s11 = scalar_lea.hbm %s4804_s8, 1024 }
  0xab   :  { %p4513_p0 = scmp.ne.s32.totalorder %s4804_s8, %s4512_s11  ;;  %p4516_p1 = scmp.lt.u32.totalorder %s4512_s11, %s4804_s8 }
  0xad   :  { %p4518_p2 = pnand %p4516_p1, %p4513_p0 }
  0xaf   :  { %4521 = shalt.err (!%p4518_p2)
}
  0xb0   :  { %s4522_s15 = scalar_lea.vmem %s113_s14, 1024  ;;  %p4527_p4 = scmp.lt.s32.totalorder %s113_s14, %s113_s14 }
  0xb1   :  { %p4523_p3 = scmp.ne.s32.totalorder %s113_s14, %s4522_s15  ;;  %p4528_p5 = scmp.lt.s32.totalorder %s4522_s15, %s4522_s15 }
  0xb3   :  { %p4529_p6 = por %p4528_p5, %p4527_p4 }
  0xb5   :  { %p4530_p7 = pnand %p4529_p6, %p4523_p3 }
  0xb7   :  { %4533 = shalt.err (!%p4530_p7)
}
  0xb8   :  { %118 = dma.hbm_to_vmem [thread:$0]  %s4804_s8, 1024, %s113_s14, [#allocation6], %s4740_s16, %s4740_s16, %s4741_s24  }
  0xb9   :  { %s4534_s13 = scalar_lea.hbm %s4814_s19, 1024 }
  0xba   :  { %p4535_p8 = scmp.ne.s32.totalorder %s4814_s19, %s4534_s13  ;;  %p4538_p9 = scmp.lt.u32.totalorder %s4534_s13, %s4814_s19 }
  0xbc   :  { %p4540_p10 = pnand %p4538_p9, %p4535_p8 }
  0xbe   :  { %4543 = shalt.err (!%p4540_p10)
}
  0xbf   :  { %s4544_s0 = scalar_lea.vmem %s135_s10, 1024  ;;  %p4549_p12 = scmp.lt.s32.totalorder %s135_s10, %s135_s10 }
  0xc0   :  { %p4545_p11 = scmp.ne.s32.totalorder %s135_s10, %s4544_s0  ;;  %p4550_p13 = scmp.lt.s32.totalorder %s4544_s0, %s4544_s0 }
  0xc2   :  { %p4551_p0 = por %p4550_p13, %p4549_p12 }
  0xc4   :  { %p4552_p1 = pnand %p4551_p0, %p4545_p11 }
  0xc6   :  { %4555 = shalt.err (!%p4552_p1)
}
  0xc7   :  { %140 = dma.hbm_to_vmem [thread:$0]  %s4814_s19, 1024, %s135_s10, [#allocation9], %s4740_s16, %s4740_s16, %s4741_s24  }
  0xc8   :  { %s4746_s8 = smov [#allocation13]   ;;  %s4747_s22 = smov [#allocation16]  }
  0xc9   :  { %s156_s18 = sshll.u32 %s4746_s8, 4  ;;  %s181_s6 = sshll.u32 %s4747_s22, 4  ;;  %s157_s18 = int_to_ptr.vmem [resolvable:$true] %s156_s18  ;;  %s182_s6 = int_to_ptr.vmem [resolvable:$true] %s181_s6 }
  0xca   :  { %s4556_s23 = scalar_lea.hbm %s4824_s30, 1024 }
  0xcb   :  { %p4557_p2 = scmp.ne.s32.totalorder %s4824_s30, %s4556_s23  ;;  %p4560_p3 = scmp.lt.u32.totalorder %s4556_s23, %s4824_s30 }
  0xcd   :  { %p4562_p4 = pnand %p4560_p3, %p4557_p2 }
  0xcf   :  { %4565 = shalt.err (!%p4562_p4)
}
  0xd0   :  { %s4566_s26 = scalar_lea.vmem %s157_s18, 1024  ;;  %p4571_p6 = scmp.lt.s32.totalorder %s157_s18, %s157_s18 }
  0xd1   :  { %p4567_p5 = scmp.ne.s32.totalorder %s157_s18, %s4566_s26  ;;  %p4572_p7 = scmp.lt.s32.totalorder %s4566_s26, %s4566_s26 }
  0xd3   :  { %p4573_p8 = por %p4572_p7, %p4571_p6 }
  0xd5   :  { %p4574_p9 = pnand %p4573_p8, %p4567_p5 }
  0xd7   :  { %4577 = shalt.err (!%p4574_p9)
}
  0xd8   :  { %162 = dma.hbm_to_vmem [thread:$0]  %s4824_s30, 1024, %s157_s18, [#allocation12], %s4740_s16, %s4740_s16, %s4741_s24  }
  0xd9   :  { %s4578_s19 = scalar_lea.hbm %s4834_s12, 16 }
  0xda   :  { %p4579_p10 = scmp.ne.s32.totalorder %s4834_s12, %s4578_s19  ;;  %p4582_p11 = scmp.lt.u32.totalorder %s4578_s19, %s4834_s12 }
  0xdc   :  { %p4584_p12 = pnand %p4582_p11, %p4579_p10 }
  0xde   :  { %4587 = shalt.err (!%p4584_p12)
}
  0xdf   :  { %s4588_s25 = scalar_lea.vmem %s182_s6, 16  ;;  %s4592_s28 = scalar_lea.vmem %s182_s6, 32 }
  0xe0   :  { %p4589_p13 = scmp.ne.s32.totalorder %s182_s6, %s4588_s25  ;;  %p4593_p0 = scmp.lt.s32.totalorder %s182_s6, %s182_s6 }
  0xe1   :  { %p4594_p1 = scmp.lt.s32.totalorder %s4592_s28, %s4588_s25 }
  0xe3   :  { %p4595_p2 = por %p4594_p1, %p4593_p0 }
  0xe5   :  { %p4596_p3 = pnand %p4595_p2, %p4589_p13 }
  0xe7   :  { %4599 = shalt.err (!%p4596_p3)
}
  0xe8   :  { %184 = dma.hbm_to_vmem [thread:$0]  %s4834_s12, 16, %s182_s6, [#allocation15]  }
  0xe9   :  { %s4748_s30 = smov [#allocation19]   ;;  %s4749_s3 = smov [#allocation22]  }
  0xea   :  { %s210_s1 = sshll.u32 %s4748_s30, 4  ;;  %s236_s2 = sshll.u32 %s4749_s3, 4  ;;  %s211_s1 = int_to_ptr.vmem [resolvable:$true] %s210_s1  ;;  %s237_s2 = int_to_ptr.vmem [resolvable:$true] %s236_s2 }
  0xeb   :  { %s4600_s29 = scalar_lea.hbm %s4864_s27, 1024 }
  0xec   :  { %p4601_p4 = scmp.ne.s32.totalorder %s4864_s27, %s4600_s29  ;;  %p4604_p5 = scmp.lt.u32.totalorder %s4600_s29, %s4864_s27 }
  0xee   :  { %p4606_p6 = pnand %p4604_p5, %p4601_p4 }
  0xf0   :  { %4609 = shalt.err (!%p4606_p6)
}
  0xf1   :  { %s4610_s14 = scalar_lea.vmem %s211_s1, 1024  ;;  %p4615_p8 = scmp.lt.s32.totalorder %s211_s1, %s211_s1 }
  0xf2   :  { %p4611_p7 = scmp.ne.s32.totalorder %s211_s1, %s4610_s14  ;;  %p4616_p9 = scmp.lt.s32.totalorder %s4610_s14, %s4610_s14 }
  0xf4   :  { %p4617_p10 = por %p4616_p9, %p4615_p8 }
  0xf6   :  { %p4618_p11 = pnand %p4617_p10, %p4611_p7 }
  0xf8   :  { %4621 = shalt.err (!%p4618_p11)
}
  0xf9   :  { %216 = dma.hbm_to_vmem [thread:$0]  %s4864_s27, 1024, %s211_s1, [#allocation18], %s4740_s16, %s4740_s16, %s4741_s24  }
  0xfa   :  { %s4622_s12 = scalar_lea.hbm %s4879_s20, 1024 }
  0xfb   :  { %p4623_p12 = scmp.ne.s32.totalorder %s4879_s20, %s4622_s12  ;;  %p4626_p13 = scmp.lt.u32.totalorder %s4622_s12, %s4879_s20 }
  0xfd   :  { %p4628_p0 = pnand %p4626_p13, %p4623_p12 }
  0xff   :  { %4631 = shalt.err (!%p4628_p0)
}
 0x100   :  { %s4632_s7 = scalar_lea.vmem %s237_s2, 1024  ;;  %p4637_p2 = scmp.lt.s32.totalorder %s237_s2, %s237_s2 }
 0x101   :  { %p4633_p1 = scmp.ne.s32.totalorder %s237_s2, %s4632_s7  ;;  %p4638_p3 = scmp.lt.s32.totalorder %s4632_s7, %s4632_s7 }
 0x103   :  { %p4639_p4 = por %p4638_p3, %p4637_p2 }
 0x105   :  { %p4640_p5 = pnand %p4639_p4, %p4633_p1 }
 0x107   :  { %4643 = shalt.err (!%p4640_p5)
}
 0x108   :  { %242 = dma.hbm_to_vmem [thread:$0]  %s4879_s20, 1024, %s237_s2, [#allocation21], %s4740_s16, %s4740_s16, %s4741_s24  }
 0x109   :  { %s4750_s27 = smov [#allocation23]   ;;  %s4644_s11 = scalar_lea.hbm %s4889_s4, 1024 }
 0x10a   :  { %s250_s10 = sshll.u32 %s4750_s27, 4  ;;  %p4645_p6 = scmp.ne.s32.totalorder %s4889_s4, %s4644_s11  ;;  %s251_s10 = int_to_ptr.vmem [resolvable:$true] %s250_s10 }
 0x10b   :  { %p4648_p7 = scmp.lt.u32.totalorder %s4644_s11, %s4889_s4 }
 0x10d   :  { %p4650_p8 = pnand %p4648_p7, %p4645_p6 }
 0x10f   :  { %4653 = shalt.err (!%p4650_p8)
}
 0x110   :  { %s4654_s15 = scalar_lea.vmem %s251_s10, 1024  ;;  %p4659_p10 = scmp.lt.s32.totalorder %s251_s10, %s251_s10 }
 0x111   :  { %p4655_p9 = scmp.ne.s32.totalorder %s251_s10, %s4654_s15  ;;  %p4660_p11 = scmp.lt.s32.totalorder %s4654_s15, %s4654_s15 }
 0x113   :  { %p4661_p12 = por %p4660_p11, %p4659_p10 }
 0x115   :  { %p4662_p13 = pnand %p4661_p12, %p4655_p9 }
 0x117   :  { %4665 = shalt.err (!%p4662_p13)
}
 0x118   :  { %256 = dma.hbm_to_vmem [thread:$0]  %s4889_s4, 1024, %s251_s10, [#allocation24], %s4740_s16, %s4740_s16, %s4741_s24  }
 0x119   :  { %4688 = dma.done.wait [#allocation3], 1024  }
 0x11a   :  { %4689 = vsyncadd [#allocation3], 4294966272 }
 0x11b   :  { %4690 = dma.done.wait [#allocation6], 1088  }
 0x11c   :  { %4691 = vsyncadd [#allocation6], 4294966208 }
 0x11d   :  { %4692 = dma.done.wait [#allocation9], 1040  }
 0x11e   :  { %4693 = vsyncadd [#allocation9], 4294966256 }
 0x11f   :  { %4694 = dma.done.wait [#allocation12], 1040  }
 0x120   :  { %4695 = vsyncadd [#allocation12], 4294966256 }
 0x121   :  { %4696 = dma.done.wait [#allocation15], 1040  }
 0x122   :  { %4697 = vsyncadd [#allocation15], 4294966256 }
 0x123   :  { %4698 = dma.done.wait [#allocation18], 2048  }
 0x124   :  { %4699 = vsyncadd [#allocation18], 4294965248 }
 0x125   :  { %4700 = dma.done.wait [#allocation21], 2048  }
 0x126   :  { %4701 = vsyncadd [#allocation21], 4294965248 }
 0x127   :  { %4702 = dma.done.wait [#allocation24], 1024  }
 0x128   :  { %4703 = vsyncadd [#allocation24], 4294966272  ;;  %s5370_s20 = sld [smem:[#allocation35_spill]]  ;;  %s5371_s4 = sld [smem:[#allocation36_spill]]  ;;  %v4247_v7 = vld [vmem:[#allocation7] sm:$0xff]   ;;  %v4248_v8 = vld [vmem:[#allocation7 + $0x8] sm:$0xff]  }
 0x129   :  { %3652 = vmatprep.subr.bf16.mxu1 %v4247_v7  ;;  %v4249_v10 = vld [vmem:[#allocation7 + $0x10] sm:$0xff]   ;;  %v4250_v12 = vld [vmem:[#allocation7 + $0x18] sm:$0xff]   ;;  %v4251_v13 = vld [vmem:[#allocation7 + $0x20] sm:$0xff]   ;;  %s5372_s16 = sld [smem:[#allocation38_spill]]  ;;  %v4751_v56 = vmov 0   ;;  %s5373_s24 = sld [smem:[#allocation37_spill]] }
 0x12a   :  { %3653 = vmatpush3.bf16.msra.mxu1 %v4247_v7  ;;  %v4252_v16 = vld [vmem:[#allocation7 + $0x28] sm:$0xff]   ;;  %v4253_v17 = vld [vmem:[#allocation7 + $0x30] sm:$0xff]   ;;  %v4254_v23 = vld [vmem:[#allocation7 + $0x38] sm:$0xff]   ;;  %4229 = vset.pattern.permute.xlu0 %v4751_v56  ;;  %s5374_s13 = sld [smem:[#allocation39_spill]]  ;;  %s5375_s0 = sld [smem:[#allocation40_spill]]  ;;  %vm4753_vm0 = vmmov 0  }
 0x12b   :  { %3654 = vmatprep.subr.bf16.mxu1 %v4248_v8  ;;  %v4255_v24 = vld [vmem:[#allocation10] sm:$0xff]   ;;  %v4256_v25 = vld [vmem:[#allocation10 + $0x8] sm:$0xff]   ;;  %v4257_v26 = vld [vmem:[#allocation10 + $0x10] sm:$0xff]   ;;  %4230 = vset.pattern.permute.xlu1 %v4751_v56  ;;  %s5376_s8 = sld [smem:[#allocation41_spill]]  ;;  %s5377_s18 = sld [smem:[#allocation42_spill]] }
 0x12c   :  { %v4258_v27 = vld [vmem:[#allocation10 + $0x18] sm:$0xff]   ;;  %v4259_v28 = vld [vmem:[#allocation10 + $0x20] sm:$0xff]   ;;  %v4260_v29 = vld [vmem:[#allocation10 + $0x28] sm:$0xff]   ;;  %s5378_s22 = sld [smem:[#allocation44_spill]]  ;;  %s5379_s6 = sld [smem:[#allocation45_spill]] }
 0x12d   :  { %v4261_v54 = vld [vmem:[#allocation10 + $0x30] sm:$0xff]   ;;  %v4262_v55 = vld [vmem:[#allocation10 + $0x38] sm:$0xff]   ;;  %s5380_s23 = sld [smem:[#allocation43_spill]]  ;;  %s5381_s26 = sld [smem:[#allocation46_spill]] }
 0x12e   :  { %v4231_v0 = vld [vmem:[%s5370_s20] sm:$0xff]   ;;  %v4232_v1 = vld [vmem:[%s5370_s20 + $0x8] sm:$0xff]   ;;  %v4233_v2 = vld [vmem:[%s5370_s20 + $0x10] sm:$0xff]   ;;  %3655 = vmatpush3.bf16.msra.mxu1 %v4248_v8 }
 0x12f   :  { %3620 = vmatprep.subr.bf16.mxu0 %v4231_v0  ;;  %v4234_v3 = vld [vmem:[%s5370_s20 + $0x18] sm:$0xff]   ;;  %v4239_v4 = vld [vmem:[%s5371_s4] sm:$0xff]   ;;  %v4236_v6 = vld [vmem:[%s5370_s20 + $0x28] sm:$0xff]   ;;  %3656 = vmatprep.subr.bf16.mxu1 %v4249_v10 }
 0x130   :  { %3621 = vmatpush3.bf16.msra.mxu0 %v4231_v0  ;;  %3636 = vmatprep.mubr.bf16.mxu0 %v4239_v4  ;;  %v4235_v5 = vld [vmem:[%s5370_s20 + $0x20] sm:$0xff]   ;;  %v4237_v9 = vld [vmem:[%s5370_s20 + $0x30] sm:$0xff]   ;;  %v4238_v11 = vld [vmem:[%s5370_s20 + $0x38] sm:$0xff]  }
 0x131   :  { %3622 = vmatprep.subr.bf16.mxu0 %v4232_v1  ;;  %v4240_v14 = vld [vmem:[%s5371_s4 + $0x8] sm:$0xff]   ;;  %v4241_v15 = vld [vmem:[%s5371_s4 + $0x10] sm:$0xff]   ;;  %v4242_v18 = vld [vmem:[%s5371_s4 + $0x18] sm:$0xff]  }
 0x132   :  { %3657 = vmatpush3.bf16.msra.mxu1 %v4249_v10  ;;  %v4243_v19 = vld [vmem:[%s5371_s4 + $0x20] sm:$0xff]   ;;  %v4244_v20 = vld [vmem:[%s5371_s4 + $0x28] sm:$0xff]   ;;  %v4245_v21 = vld [vmem:[%s5371_s4 + $0x30] sm:$0xff]  }
 0x133   :  { %3658 = vmatprep.subr.bf16.mxu1 %v4250_v12  ;;  %v4246_v22 = vld [vmem:[%s5371_s4 + $0x38] sm:$0xff]   ;;  %v354_v57 = vld [vmem:[%s5372_s16] sm:$0xff]  ;;  %v355_v58 = vld [vmem:[%s5372_s16 + $0x8] sm:$0xff] }
 0x134   :  { %3623 = vmatpush3.bf16.msra.mxu0 %v4232_v1  ;;  %950 = vperm.xlu0 %4229, %v354_v57   ;;  %v356_v59 = vld [vmem:[%s5372_s16 + $0x10] sm:$0xff]  ;;  %v358_v60 = vld [vmem:[%s5372_s16 + $0x20] sm:$0xff]  ;;  %v357_v61 = vld [vmem:[%s5372_s16 + $0x18] sm:$0xff] }
 0x135   :  { %3624 = vmatprep.subr.bf16.mxu0 %v4233_v2  ;;  %960 = vperm.xlu1 %4230, %v356_v59   ;;  %v360_v62 = vld [vmem:[%s5372_s16 + $0x30] sm:$0xff]  ;;  %v359_v63 = vld [vmem:[%s5372_s16 + $0x28] sm:$0xff]  ;;  %v362_v0 = vld [vmem:[%s5372_s16 + $0x40] sm:$0xff] }
 0x136   :  { %3659 = vmatpush3.bf16.msra.mxu1 %v4250_v12  ;;  %v361_v1 = vld [vmem:[%s5372_s16 + $0x38] sm:$0xff]  ;;  %v366_v4 = vld [vmem:[%s5372_s16 + $0x60] sm:$0xff]  ;;  %v367_v7 = vld [vmem:[%s5372_s16 + $0x68] sm:$0xff] }
 0x137   :  { %3660 = vmatprep.subr.bf16.mxu1 %v4251_v13  ;;  %v338_v8 = vld [vmem:[%s5373_s24] sm:$0xff]  ;;  %v340_v10 = vld [vmem:[%s5373_s24 + $0x10] sm:$0xff] }
 0x138   :  { %3625 = vmatpush3.bf16.msra.mxu0 %v4233_v2  ;;  %955 = vperm.xlu0 %4229, %v355_v58   ;;  %v364_v2 = vld [vmem:[%s5372_s16 + $0x50] sm:$0xff]  ;;  %v342_v12 = vld [vmem:[%s5373_s24 + $0x20] sm:$0xff] }
 0x139   :  { %3626 = vmatprep.subr.bf16.mxu0 %v4234_v3  ;;  %965 = vperm.xlu1 %4230, %v357_v61  }
 0x13a   :  { %3661 = vmatpush3.bf16.msra.mxu1 %v4251_v13  ;;  %v341_v13 = vld [vmem:[%s5373_s24 + $0x18] sm:$0xff] }
 0x13b   :  { %3662 = vmatprep.subr.bf16.mxu1 %v4252_v16 }
 0x13c   :  { %3627 = vmatpush3.bf16.msra.mxu0 %v4234_v3  ;;  %970 = vperm.xlu0 %4229, %v358_v60   ;;  %v363_v3 = vld [vmem:[%s5372_s16 + $0x48] sm:$0xff] }
 0x13d   :  { %3628 = vmatprep.subr.bf16.mxu0 %v4235_v5  ;;  %975 = vperm.xlu1 %4230, %v359_v63  }
 0x13e   :  { %3663 = vmatpush3.bf16.msra.mxu1 %v4252_v16  ;;  %v346_v16 = vld [vmem:[%s5373_s24 + $0x40] sm:$0xff] }
 0x13f   :  { %3664 = vmatprep.subr.bf16.mxu1 %v4253_v17 }
 0x140   :  { %3629 = vmatpush3.bf16.msra.mxu0 %v4235_v5  ;;  %980 = vperm.xlu0 %4229, %v360_v62   ;;  %v365_v5 = vld [vmem:[%s5372_s16 + $0x58] sm:$0xff] }
 0x141   :  { %3630 = vmatprep.subr.bf16.mxu0 %v4236_v6  ;;  %985 = vperm.xlu1 %4230, %v361_v1  }
 0x142   :  { %3665 = vmatpush3.bf16.msra.mxu1 %v4253_v17  ;;  %v345_v17 = vld [vmem:[%s5373_s24 + $0x38] sm:$0xff] }
 0x143   :  { %3666 = vmatprep.subr.bf16.mxu1 %v4254_v23 }
 0x144   :  { %3631 = vmatpush3.bf16.msra.mxu0 %v4236_v6  ;;  %990 = vperm.xlu0 %4229, %v362_v0   ;;  %v368_v6 = vld [vmem:[%s5372_s16 + $0x70] sm:$0xff] }
 0x145   :  { %3632 = vmatprep.subr.bf16.mxu0 %v4237_v9  ;;  %995 = vperm.xlu1 %4230, %v363_v3  }
 0x146   :  { %3667 = vmatpush3.bf16.msra.mxu1 %v4254_v23  ;;  %v351_v23 = vld [vmem:[%s5373_s24 + $0x68] sm:$0xff] }
 0x148   :  { %3633 = vmatpush3.bf16.msra.mxu0 %v4237_v9  ;;  %1000 = vperm.xlu0 %4229, %v364_v2   ;;  %v369_v9 = vld [vmem:[%s5372_s16 + $0x78] sm:$0xff] }
 0x149   :  { %3634 = vmatprep.subr.bf16.mxu0 %v4238_v11  ;;  %1005 = vperm.xlu1 %4230, %v365_v5  }
 0x14c   :  { %3635 = vmatpush3.bf16.msra.mxu0 %v4238_v11  ;;  %1010 = vperm.xlu0 %4229, %v366_v4   ;;  %v339_v11 = vld [vmem:[%s5373_s24 + $0x8] sm:$0xff] }
 0x14d   :  { %3684 = vmatprep.subr.bf16.mxu0 %v4255_v24  ;;  %1015 = vperm.xlu1 %4230, %v367_v7  }
 0x14f   :  { %3637 = vmatmul.mubr.bf16.vlgmr.msra.gmra.mrb[0].mxu0 %v4240_v14  ;;  %v344_v14 = vld [vmem:[%s5373_s24 + $0x30] sm:$0xff] }
 0x150   :  { %3640 = vmatprep.mubr.bf16.mxu0 %v4241_v15  ;;  %3685 = vmatpush3.bf16.msra.mxu0 %v4255_v24  ;;  %v343_v15 = vld [vmem:[%s5373_s24 + $0x28] sm:$0xff]  ;;  %v3103_v24 = vld [vmem:[%s5374_s13] sm:$0xff] }
 0x151   :  { %3686 = vmatprep.subr.bf16.mxu0 %v4256_v25  ;;  %1020 = vperm.xlu0 %4229, %v368_v6  }
 0x152   :  { %1025 = vperm.xlu1 %4230, %v369_v9  }
 0x154   :  { %3687 = vmatpush3.bf16.msra.mxu0 %v4256_v25  ;;  %v353_v25 = vld [vmem:[%s5373_s24 + $0x78] sm:$0xff] }
 0x155   :  { %3688 = vmatprep.subr.bf16.mxu0 %v4257_v26  ;;  %1221 = vperm.xlu0 %4229, %v338_v8  }
 0x156   :  { %1226 = vperm.xlu1 %4230, %v339_v11  }
 0x157   :  { %3641 = vmatmul.mubr.bf16.gmra.mrb[4].mxu0 %v4242_v18  ;;  %v348_v18 = vld [vmem:[%s5373_s24 + $0x50] sm:$0xff] }
 0x158   :  { %3644 = vmatprep.mubr.bf16.mxu0 %v4243_v19  ;;  %3689 = vmatpush3.bf16.msra.mxu0 %v4257_v26  ;;  %v347_v19 = vld [vmem:[%s5373_s24 + $0x48] sm:$0xff]  ;;  %v3271_v26 = vld [vmem:[#allocation8] ss:$0 sm:$0xff] }
 0x159   :  { %3690 = vmatprep.subr.bf16.mxu0 %v4258_v27  ;;  %1231 = vperm.xlu0 %4229, %v340_v10  }
 0x15a   :  { %1236 = vperm.xlu1 %4230, %v341_v13  }
 0x15c   :  { %3691 = vmatpush3.bf16.msra.mxu0 %v4258_v27 }
 0x15d   :  { %3692 = vmatprep.subr.bf16.mxu0 %v4259_v28  ;;  %1241 = vperm.xlu0 %4229, %v342_v12  }
 0x15e   :  { %1246 = vperm.xlu1 %4230, %v343_v15  }
 0x15f   :  { %3645 = vmatmul.mubr.bf16.gmra.mrb[8].mxu0 %v4244_v20  ;;  %v350_v20 = vld [vmem:[%s5373_s24 + $0x60] sm:$0xff] }
 0x160   :  { %3648 = vmatprep.mubr.bf16.mxu0 %v4245_v21  ;;  %3693 = vmatpush3.bf16.msra.mxu0 %v4259_v28  ;;  %v349_v21 = vld [vmem:[%s5373_s24 + $0x58] sm:$0xff] }
 0x161   :  { %3694 = vmatprep.subr.bf16.mxu0 %v4260_v29  ;;  %1251 = vperm.xlu0 %4229, %v344_v14  }
 0x162   :  { %1256 = vperm.xlu1 %4230, %v345_v17  }
 0x164   :  { %3695 = vmatpush3.bf16.msra.mxu0 %v4260_v29 }
 0x165   :  { %3696 = vmatprep.subr.bf16.mxu0 %v4261_v54  ;;  %1261 = vperm.xlu0 %4229, %v346_v16  }
 0x166   :  { %1266 = vperm.xlu1 %4230, %v347_v19   ;;  %v5046_v19 = vld [vmem:[#allocation2] sm:$0xff]  }
 0x167   :  { %3649 = vmatmul.mubr.bf16.gmra.mrb[12].mxu0 %v4246_v22  ;;  %v352_v22 = vld [vmem:[%s5373_s24 + $0x70] sm:$0xff] }
 0x168   :  { %3697 = vmatpush3.bf16.msra.mxu0 %v4261_v54 }
 0x169   :  { %3698 = vmatprep.subr.bf16.mxu0 %v4262_v55  ;;  %1271 = vperm.xlu0 %4229, %v348_v18  }
 0x16a   :  { %1276 = vperm.xlu1 %4230, %v349_v21   ;;  %v4272_v21 = vld [vmem:[#allocation14 + $0x8] sm:$0xff]  }
 0x16c   :  { %3699 = vmatpush3.bf16.msra.mxu0 %v4262_v55 }
 0x16d   :  { %1281 = vperm.xlu0 %4229, %v350_v20   ;;  %v4271_v20 = vld [vmem:[#allocation14] sm:$0xff]  }
 0x16e   :  { %1286 = vperm.xlu1 %4230, %v351_v23   ;;  %3748 = vmatprep.subr.bf16.mxu0 %v4271_v20  ;;  %v4274_v23 = vld [vmem:[#allocation14 + $0x18] sm:$0xff]  }
 0x171   :  { %1291 = vperm.xlu0 %4229, %v352_v22   ;;  %v4273_v22 = vld [vmem:[#allocation14 + $0x10] sm:$0xff]  }
 0x172   :  { %1296 = vperm.xlu1 %4230, %v353_v25   ;;  %v4276_v25 = vld [vmem:[#allocation14 + $0x28] sm:$0xff]  }
 0x175   :  { %3106 = vperm.xlu0 %4229, %v3103_v24   ;;  %v4275_v24 = vld [vmem:[#allocation14 + $0x20] sm:$0xff]  }
 0x222   :  { %v3638_v30 = vpop.f32.mrb[0].mxu0 }
 0x223   :  { %v516_v31 = vpop.f32.mrb[1].mxu0 }
 0x224   :  { %v3639_v32 = vpop.f32.mrb[2].mxu0 }
 0x225   :  { %v580_v33 = vpack.c.bf16 %v3639_v32, %v3638_v30  ;;  %v519_v34 = vpop.f32.mrb[3].mxu0 }
 0x226   :  { %v579_v35 = vpack.c.bf16 %v519_v34, %v516_v31 }
 0x228   :  { %3668 = vmatprep.mubr.bf16.mxu1 %v579_v35 }
 0x229   :  { %3669 = vmatmul.mubr.bf16.vlgmr.msra.gmra.mrb[0].mxu1 %v580_v33 }
 0x22a   :  { %v3642_v36 = vpop.f32.mrb[4].mxu0 }
 0x22b   :  { %v532_v37 = vpop.f32.mrb[5].mxu0 }
 0x22c   :  { %v3643_v38 = vpop.f32.mrb[6].mxu0 }
 0x22d   :  { %v582_v39 = vpack.c.bf16 %v3643_v38, %v3642_v36  ;;  %v535_v40 = vpop.f32.mrb[7].mxu0 }
 0x22e   :  { %v581_v41 = vpack.c.bf16 %v535_v40, %v532_v37 }
 0x230   :  { %3672 = vmatprep.mubr.bf16.mxu1 %v581_v41 }
 0x231   :  { %3673 = vmatmul.mubr.bf16.gmra.mrb[4].mxu1 %v582_v39 }
 0x232   :  { %v3646_v42 = vpop.f32.mrb[8].mxu0 }
 0x233   :  { %v548_v43 = vpop.f32.mrb[9].mxu0 }
 0x234   :  { %v3647_v44 = vpop.f32.mrb[10].mxu0 }
 0x235   :  { %v584_v45 = vpack.c.bf16 %v3647_v44, %v3646_v42  ;;  %v551_v46 = vpop.f32.mrb[11].mxu0 }
 0x236   :  { %v583_v47 = vpack.c.bf16 %v551_v46, %v548_v43 }
 0x238   :  { %3676 = vmatprep.mubr.bf16.mxu1 %v583_v47 }
 0x239   :  { %3677 = vmatmul.mubr.bf16.gmra.mrb[8].mxu1 %v584_v45 }
 0x23a   :  { %v3650_v48 = vpop.f32.mrb[12].mxu0 }
 0x23b   :  { %v564_v49 = vpop.f32.mrb[13].mxu0 }
 0x23c   :  { %v3651_v50 = vpop.f32.mrb[14].mxu0 }
 0x23d   :  { %v586_v51 = vpack.c.bf16 %v3651_v50, %v3650_v48  ;;  %v567_v52 = vpop.f32.mrb[15].mxu0 }
 0x23e   :  { %v585_v53 = vpack.c.bf16 %v567_v52, %v564_v49 }
 0x240   :  { %3680 = vmatprep.mubr.bf16.mxu1 %v585_v53 }
 0x241   :  { %3681 = vmatmul.mubr.bf16.gmra.mrb[12].mxu1 %v586_v51 }
 0x242   :  { %3732 = vmatprep.mubr.bf16.mxu1 %v5046_v19 }
 0x2fc   :  { %v3670_v27 = vpop.f32.mrb[0].mxu1 }
 0x2fd   :  { %v701_v28 = vadd.f32 %v3670_v27, %v3271_v26  ;;  %v692_v29 = vpop.f32.mrb[1].mxu1  ;;  %v5051_v27 = vpop.permute.xlu1 %960 }
 0x2fe   :  { %v693_v30 = vadd.f32 %v3271_v26, %v692_v29  ;;  %v3671_v31 = vpop.f32.mrb[2].mxu1 }
 0x2ff   :  { %v704_v32 = vadd.f32 %v3671_v31, %v3271_v26  ;;  %v695_v33 = vpop.f32.mrb[3].mxu1  ;;  %v757_v35 = vmax.f32 %v701_v28, 0.0 }
 0x300   :  { %v696_v34 = vadd.f32 %v3271_v26, %v695_v33  ;;  %v755_v37 = vmax.f32 %v693_v30, 0.0  ;;  %v5064_v33 = vld [vmem:[#allocation11] ss:$0 sm:$0xff] }
 0x301   :  { %v758_v36 = vmax.f32 %v704_v32, 0.0  ;;  %v5055_v29 = vpop.permute.xlu1 %965  ;;  %v5062_v32 = vld [vmem:[%s5375_s0] ss:$0 sm:$0xff] }
 0x302   :  { %v756_v38 = vmax.f32 %v696_v34, 0.0 }
 0x303   :  { %v772_v39 = vpack.c.bf16 %v758_v36, %v757_v35  ;;  %v1036_v35 = vmul.f32 %v5062_v32, %v5051_v27  ;;  %v1037_v36 = vmul.f32 %v5062_v32, %v5055_v29 }
 0x304   :  { %v771_v40 = vpack.c.bf16 %v756_v38, %v755_v37  ;;  %v3674_v41 = vpop.f32.mrb[4].mxu1 }
 0x305   :  { %v717_v42 = vadd.f32 %v3674_v41, %v3271_v26  ;;  %v708_v43 = vpop.f32.mrb[5].mxu1  ;;  %v5059_v31 = vpop.permute.xlu1 %975 }
 0x306   :  { %v709_v44 = vadd.f32 %v3271_v26, %v708_v43  ;;  %v3675_v45 = vpop.f32.mrb[6].mxu1  ;;  %3700 = vmatprep.mubr.bf16.mxu0 %v771_v40 }
 0x307   :  { %v720_v46 = vadd.f32 %v3675_v45, %v3271_v26  ;;  %v711_v47 = vpop.f32.mrb[7].mxu1  ;;  %3701 = vmatmul.mubr.bf16.vlgmr.msra.gmra.mrb[16].mxu0 %v772_v39  ;;  %v761_v49 = vmax.f32 %v717_v42, 0.0 }
 0x308   :  { %v712_v48 = vadd.f32 %v3271_v26, %v711_v47  ;;  %v759_v51 = vmax.f32 %v709_v44, 0.0  ;;  %3749 = vmatpush3.bf16.msra.mxu0 %v4271_v20 }
 0x309   :  { %v762_v50 = vmax.f32 %v720_v46, 0.0  ;;  %3750 = vmatprep.subr.bf16.mxu0 %v4272_v21  ;;  %v5073_v40 = vpop.permute.xlu1 %985 }
 0x30a   :  { %v760_v52 = vmax.f32 %v712_v48, 0.0 }
 0x30b   :  { %v774_v53 = vpack.c.bf16 %v762_v50, %v761_v49 }
 0x30c   :  { %v773_v54 = vpack.c.bf16 %v760_v52, %v759_v51  ;;  %v3678_v55 = vpop.f32.mrb[8].mxu1  ;;  %3751 = vmatpush3.bf16.msra.mxu0 %v4272_v21 }
 0x30d   :  { %v733_v56 = vadd.f32 %v3678_v55, %v3271_v26  ;;  %v724_v57 = vpop.f32.mrb[9].mxu1  ;;  %3752 = vmatprep.subr.bf16.mxu0 %v4273_v22 }
 0x30e   :  { %v725_v58 = vadd.f32 %v3271_v26, %v724_v57  ;;  %v3679_v59 = vpop.f32.mrb[10].mxu1  ;;  %3704 = vmatprep.mubr.bf16.mxu0 %v773_v54  ;;  %v5084_v54 = vpop.permute.xlu1 %995 }
 0x30f   :  { %v736_v60 = vadd.f32 %v3679_v59, %v3271_v26  ;;  %v727_v61 = vpop.f32.mrb[11].mxu1  ;;  %3705 = vmatmul.mubr.bf16.gmra.mrb[20].mxu0 %v774_v53  ;;  %v765_v63 = vmax.f32 %v733_v56, 0.0 }
 0x310   :  { %v728_v62 = vadd.f32 %v3271_v26, %v727_v61  ;;  %v763_v1 = vmax.f32 %v725_v58, 0.0  ;;  %3753 = vmatpush3.bf16.msra.mxu0 %v4273_v22 }
 0x311   :  { %v766_v0 = vmax.f32 %v736_v60, 0.0  ;;  %3754 = vmatprep.subr.bf16.mxu0 %v4274_v23 }
 0x312   :  { %v764_v2 = vmax.f32 %v728_v62, 0.0  ;;  %v1041_v62 = vmul.f32 %v5062_v32, %v5073_v40 }
 0x313   :  { %v776_v3 = vpack.c.bf16 %v766_v0, %v765_v63 }
 0x314   :  { %v775_v4 = vpack.c.bf16 %v764_v2, %v763_v1  ;;  %v3682_v5 = vpop.f32.mrb[12].mxu1  ;;  %3755 = vmatpush3.bf16.msra.mxu0 %v4274_v23  ;;  %v1039_v2 = vmul.f32 %v5062_v32, %v5059_v31 }
 0x315   :  { %v749_v6 = vadd.f32 %v3682_v5, %v3271_v26  ;;  %v740_v7 = vpop.f32.mrb[13].mxu1  ;;  %3756 = vmatprep.subr.bf16.mxu0 %v4275_v24 }
 0x316   :  { %v741_v8 = vadd.f32 %v3271_v26, %v740_v7  ;;  %v3683_v9 = vpop.f32.mrb[14].mxu1  ;;  %3708 = vmatprep.mubr.bf16.mxu0 %v775_v4  ;;  %v5100_v7 = vpop.permute.xlu1 %1005 }
 0x317   :  { %v752_v10 = vadd.f32 %v3683_v9, %v3271_v26  ;;  %v743_v11 = vpop.f32.mrb[15].mxu1  ;;  %3709 = vmatmul.mubr.bf16.gmra.mrb[24].mxu0 %v776_v3  ;;  %v769_v13 = vmax.f32 %v749_v6, 0.0  ;;  %v1045_v20 = vmul.f32 %v5062_v32, %v5100_v7 }
 0x318   :  { %v744_v12 = vadd.f32 %v3271_v26, %v743_v11  ;;  %v767_v15 = vmax.f32 %v741_v8, 0.0  ;;  %3757 = vmatpush3.bf16.msra.mxu0 %v4275_v24  ;;  %v5049_v26 = vpop.permute.xlu0 %950  ;;  %v1043_v24 = vmul.f32 %v5062_v32, %v5084_v54 }
 0x319   :  { %v770_v14 = vmax.f32 %v752_v10, 0.0  ;;  %3758 = vmatprep.subr.bf16.mxu0 %v4276_v25  ;;  %v1034_v45 = vmul.f32 %v5062_v32, %v5049_v26 }
 0x31a   :  { %v768_v16 = vmax.f32 %v744_v12, 0.0 }
 0x31b   :  { %v778_v17 = vpack.c.bf16 %v770_v14, %v769_v13 }
 0x31c   :  { %v777_v18 = vpack.c.bf16 %v768_v16, %v767_v15  ;;  %3759 = vmatpush3.bf16.msra.mxu0 %v4276_v25  ;;  %v5053_v28 = vpop.permute.xlu0 %955  ;;  %v5115_v25 = vpop.permute.xlu1 %1015 }
 0x31d   :  { %v1035_v46 = vmul.f32 %v5062_v32, %v5053_v28 }
 0x31e   :  { %3712 = vmatprep.mubr.bf16.mxu0 %v777_v18 }
 0x31f   :  { %3713 = vmatmul.mubr.bf16.gmra.mrb[28].mxu0 %v778_v17 }
 0x320   :  { %v5057_v30 = vpop.permute.xlu0 %970 }
 0x321   :  { %v1038_v1 = vmul.f32 %v5062_v32, %v5057_v30 }
 0x324   :  { %v5070_v37 = vpop.permute.xlu0 %980 }
 0x325   :  { %v1040_v61 = vmul.f32 %v5062_v32, %v5070_v37 }
 0x328   :  { %v5082_v52 = vpop.permute.xlu0 %990 }
 0x329   :  { %v1042_v23 = vmul.f32 %v5062_v32, %v5082_v52 }
 0x32c   :  { %v5098_v4 = vpop.permute.xlu0 %1000 }
 0x32d   :  { %v1044_v17 = vmul.f32 %v5062_v32, %v5098_v4 }
 0x330   :  { %v5106_v18 = vpop.permute.xlu0 %1010 }
 0x3da   :  { %v3702_v34 = vpop.f32.mrb[16].mxu0 }
 0x3db   :  { %v893_v38 = vadd.f32 %v3702_v34, %v5064_v33  ;;  %v884_v39 = vpop.f32.mrb[17].mxu0 }
 0x3dc   :  { %v885_v41 = vadd.f32 %v5064_v33, %v884_v39  ;;  %v3703_v42 = vpop.f32.mrb[18].mxu0 }
 0x3dd   :  { %v896_v43 = vadd.f32 %v3703_v42, %v5064_v33  ;;  %v887_v44 = vpop.f32.mrb[19].mxu0  ;;  %v1052_v48 = vmul.f32 %v1036_v35, %v893_v38 }
 0x3de   :  { %v888_v47 = vadd.f32 %v5064_v33, %v887_v44  ;;  %v1050_v50 = vmul.f32 %v1034_v45, %v885_v41  ;;  %v5118_v44 = vpop.permute.xlu0 %1020 }
 0x3df   :  { %v1053_v49 = vmul.f32 %v1037_v36, %v896_v43 }
 0x3e0   :  { %v1051_v51 = vmul.f32 %v1035_v46, %v888_v47  ;;  %v5121_v47 = vpop.permute.xlu1 %1025 }
 0x3e1   :  { %v1067_v53 = vpack.c.bf16 %v1053_v49, %v1052_v48 }
 0x3e2   :  { %v3706_v55 = vpop.f32.mrb[20].mxu0  ;;  %v1066_v56 = vpack.c.bf16 %v1051_v51, %v1050_v50  ;;  %v1048_v50 = vmul.f32 %v5062_v32, %v5118_v44  ;;  %v1049_v51 = vmul.f32 %v5062_v32, %v5121_v47 }
 0x3e3   :  { %v909_v57 = vadd.f32 %v3706_v55, %v5064_v33  ;;  %v900_v58 = vpop.f32.mrb[21].mxu0 }
 0x3e4   :  { %v901_v59 = vadd.f32 %v5064_v33, %v900_v58  ;;  %v3707_v60 = vpop.f32.mrb[22].mxu0  ;;  %3716 = vmatprep.subr.bf16.mxu1 %v1066_v56 }
 0x3e5   :  { %v912_v63 = vadd.f32 %v3707_v60, %v5064_v33  ;;  %v903_v0 = vpop.f32.mrb[23].mxu0  ;;  %3717 = vmatpush3.bf16.msra.mxu1 %v1066_v56  ;;  %v1056_v5 = vmul.f32 %v1040_v61, %v909_v57  ;;  %v1046_v56 = vmul.f32 %v5062_v32, %v5106_v18  ;;  %v1047_v57 = vmul.f32 %v5062_v32, %v5115_v25  ;;  %v4267_v32 = vld [vmem:[#allocation2 + $0x20] sm:$0xff]  }
 0x3e6   :  { %v904_v3 = vadd.f32 %v5064_v33, %v903_v0  ;;  %3718 = vmatprep.subr.bf16.mxu1 %v1067_v53  ;;  %v1054_v8 = vmul.f32 %v1038_v1, %v901_v59  ;;  %v4264_v1 = vld [vmem:[#allocation2 + $0x8] sm:$0xff]  }
 0x3e7   :  { %v1057_v6 = vmul.f32 %v1041_v62, %v912_v63 }
 0x3e8   :  { %v1055_v9 = vmul.f32 %v1039_v2, %v904_v3  ;;  %v4265_v2 = vld [vmem:[#allocation2 + $0x10] sm:$0xff]   ;;  %v4266_v3 = vld [vmem:[#allocation2 + $0x18] sm:$0xff]  }
 0x3e9   :  { %3719 = vmatpush3.bf16.msra.mxu1 %v1067_v53  ;;  %v1069_v10 = vpack.c.bf16 %v1057_v6, %v1056_v5  ;;  %v4269_v5 = vld [vmem:[#allocation2 + $0x30] sm:$0xff]   ;;  %v4270_v6 = vld [vmem:[#allocation2 + $0x38] sm:$0xff]  }
 0x3ea   :  { %v3710_v11 = vpop.f32.mrb[24].mxu0  ;;  %v1068_v12 = vpack.c.bf16 %v1055_v9, %v1054_v8  ;;  %v4277_v8 = vld [vmem:[#allocation14 + $0x30] sm:$0xff]   ;;  %v4278_v9 = vld [vmem:[#allocation14 + $0x38] sm:$0xff]  }
 0x3eb   :  { %v925_v13 = vadd.f32 %v3710_v11, %v5064_v33  ;;  %v916_v14 = vpop.f32.mrb[25].mxu0  ;;  %3760 = vmatprep.subr.bf16.mxu0 %v4277_v8  ;;  %v4287_v11 = vld [vmem:[%s5376_s8] sm:$0xff]  }
 0x3ec   :  { %v917_v15 = vadd.f32 %v5064_v33, %v916_v14  ;;  %v3711_v16 = vpop.f32.mrb[26].mxu0  ;;  %3720 = vmatprep.subr.bf16.mxu1 %v1068_v12  ;;  %3761 = vmatpush3.bf16.msra.mxu0 %v4277_v8  ;;  %v4290_v14 = vld [vmem:[%s5376_s8 + $0x18] sm:$0xff]  }
 0x3ed   :  { %v928_v21 = vadd.f32 %v3711_v16, %v5064_v33  ;;  %v919_v22 = vpop.f32.mrb[27].mxu0  ;;  %3721 = vmatpush3.bf16.msra.mxu1 %v1068_v12  ;;  %v1060_v35 = vmul.f32 %v1044_v17, %v925_v13  ;;  %3762 = vmatprep.subr.bf16.mxu0 %v4278_v9  ;;  %v4288_v12 = vld [vmem:[%s5376_s8 + $0x8] sm:$0xff]   ;;  %v4289_v13 = vld [vmem:[%s5376_s8 + $0x10] sm:$0xff]   ;;  %v5140_v17 = vpop.permute.xlu0 %1221 }
 0x3ee   :  { %v920_v34 = vadd.f32 %v5064_v33, %v919_v22  ;;  %3722 = vmatprep.subr.bf16.mxu1 %v1069_v10  ;;  %v1058_v38 = vmul.f32 %v1042_v23, %v917_v15  ;;  %v4291_v15 = vld [vmem:[%s5376_s8 + $0x20] sm:$0xff]   ;;  %v4292_v16 = vld [vmem:[%s5376_s8 + $0x28] sm:$0xff]  }
 0x3ef   :  { %v1061_v36 = vmul.f32 %v1045_v20, %v928_v21  ;;  %v5142_v20 = vpop.permute.xlu1 %1226 }
 0x3f0   :  { %v1059_v39 = vmul.f32 %v1043_v24, %v920_v34  ;;  %3763 = vmatpush3.bf16.msra.mxu0 %v4278_v9 }
 0x3f1   :  { %3723 = vmatpush3.bf16.msra.mxu1 %v1069_v10  ;;  %v1071_v41 = vpack.c.bf16 %v1061_v36, %v1060_v35  ;;  %v4279_v10 = vld [vmem:[#allocation13] sm:$0xff]   ;;  %v5144_v21 = vpop.permute.xlu0 %1231 }
 0x3f2   :  { %v3714_v42 = vpop.f32.mrb[28].mxu0  ;;  %v1070_v43 = vpack.c.bf16 %v1059_v39, %v1058_v38  ;;  %3780 = vmatprep.subr.bf16.mxu0 %v4279_v10 }
 0x3f3   :  { %v941_v45 = vadd.f32 %v3714_v42, %v5064_v33  ;;  %v932_v46 = vpop.f32.mrb[29].mxu0  ;;  %v5146_v22 = vpop.permute.xlu1 %1236 }
 0x3f4   :  { %v933_v48 = vadd.f32 %v5064_v33, %v932_v46  ;;  %v3715_v49 = vpop.f32.mrb[30].mxu0  ;;  %3724 = vmatprep.subr.bf16.mxu1 %v1070_v43 }
 0x3f5   :  { %v944_v53 = vadd.f32 %v3715_v49, %v5064_v33  ;;  %v935_v55 = vpop.f32.mrb[31].mxu0  ;;  %3725 = vmatpush3.bf16.msra.mxu1 %v1070_v43  ;;  %v1064_v59 = vmul.f32 %v1048_v50, %v941_v45  ;;  %v5148_v23 = vpop.permute.xlu0 %1241 }
 0x3f6   :  { %v936_v58 = vadd.f32 %v5064_v33, %v935_v55  ;;  %3726 = vmatprep.subr.bf16.mxu1 %v1071_v41  ;;  %v1062_v61 = vmul.f32 %v1046_v56, %v933_v48  ;;  %v4268_v33 = vld [vmem:[#allocation2 + $0x28] sm:$0xff]  }
 0x3f7   :  { %v1065_v60 = vmul.f32 %v1049_v51, %v944_v53  ;;  %v5150_v24 = vpop.permute.xlu1 %1246  ;;  %v4280_v51 = vld [vmem:[#allocation13 + $0x8] sm:$0xff]  }
 0x3f8   :  { %v1063_v62 = vmul.f32 %v1047_v57, %v936_v58 }
 0x3f9   :  { %3727 = vmatpush3.bf16.msra.mxu1 %v1071_v41  ;;  %v1073_v63 = vpack.c.bf16 %v1065_v60, %v1064_v59  ;;  %v5152_v35 = vpop.permute.xlu0 %1251 }
 0x3fa   :  { %v1072_v0 = vpack.c.bf16 %v1063_v62, %v1062_v61  ;;  %v4281_v61 = vld [vmem:[#allocation13 + $0x10] sm:$0xff]  }
 0x3fb   :  { %v5154_v38 = vpop.permute.xlu1 %1256 }
 0x3fc   :  { %3728 = vmatprep.subr.bf16.mxu1 %v1072_v0 }
 0x3fd   :  { %3729 = vmatpush3.bf16.msra.mxu1 %v1072_v0  ;;  %v5160_v50 = vpop.permute.xlu0 %1261 }
 0x3fe   :  { %3730 = vmatprep.subr.bf16.mxu1 %v1073_v63 }
 0x3ff   :  { %v5162_v53 = vpop.permute.xlu1 %1266 }
 0x401   :  { %3731 = vmatpush3.bf16.msra.mxu1 %v1073_v63  ;;  %v5168_v0 = vpop.permute.xlu0 %1271 }
 0x402   :  { %3812 = vmatprep.subr.bf16.mxu1 %v4287_v11 }
 0x404   :  { %3733 = vmatmul.mubr.bf16.vlgmr.msra.gmra.mrb[16].mxu1 %v4264_v1 }
 0x405   :  { %3736 = vmatprep.mubr.bf16.mxu1 %v4265_v2  ;;  %3813 = vmatpush3.bf16.msra.mxu1 %v4287_v11  ;;  %v5170_v2 = vpop.permute.xlu1 %1276  ;;  %v5172_v8 = vpop.permute.xlu0 %1281 }
 0x406   :  { %3814 = vmatprep.subr.bf16.mxu1 %v4288_v12 }
 0x409   :  { %3815 = vmatpush3.bf16.msra.mxu1 %v4288_v12  ;;  %v4283_v12 = vld [vmem:[#allocation13 + $0x20] sm:$0xff]  }
 0x40a   :  { %3816 = vmatprep.subr.bf16.mxu1 %v4289_v13 }
 0x40c   :  { %3737 = vmatmul.mubr.bf16.gmra.mrb[20].mxu1 %v4266_v3 }
 0x40d   :  { %3740 = vmatprep.mubr.bf16.mxu1 %v4267_v32  ;;  %3817 = vmatpush3.bf16.msra.mxu1 %v4289_v13  ;;  %v4282_v32 = vld [vmem:[#allocation13 + $0x18] sm:$0xff]   ;;  %v5176_v13 = vpop.permute.xlu1 %1286 }
 0x40e   :  { %3818 = vmatprep.subr.bf16.mxu1 %v4290_v14 }
 0x411   :  { %3819 = vmatpush3.bf16.msra.mxu1 %v4290_v14 }
 0x412   :  { %3820 = vmatprep.subr.bf16.mxu1 %v4291_v15 }
 0x414   :  { %3741 = vmatmul.mubr.bf16.gmra.mrb[24].mxu1 %v4268_v33 }
 0x415   :  { %3744 = vmatprep.mubr.bf16.mxu1 %v4269_v5  ;;  %3821 = vmatpush3.bf16.msra.mxu1 %v4291_v15 }
 0x416   :  { %3822 = vmatprep.subr.bf16.mxu1 %v4292_v16 }
 0x419   :  { %3823 = vmatpush3.bf16.msra.mxu1 %v4292_v16 }
 0x41c   :  { %3745 = vmatmul.mubr.bf16.gmra.mrb[28].mxu1 %v4270_v6 }
 0x4d7   :  { %v3734_v34 = vpop.f32.mrb[16].mxu1 }
 0x4d8   :  { %v1156_v36 = vpop.f32.mrb[17].mxu1  ;;  %v1301_v41 = vmul.f32 %v3734_v34, %v5144_v21 }
 0x4d9   :  { %v3735_v39 = vpop.f32.mrb[18].mxu1  ;;  %v1299_v45 = vmul.f32 %v5140_v17, %v1156_v36  ;;  %v4284_v36 = vld [vmem:[#allocation13 + $0x28] sm:$0xff]  }
 0x4da   :  { %v1302_v42 = vmul.f32 %v3735_v39, %v5146_v22  ;;  %v1159_v43 = vpop.f32.mrb[19].mxu1 }
 0x4db   :  { %v1300_v46 = vmul.f32 %v5142_v20, %v1159_v43  ;;  %v5182_v43 = vpop.permute.xlu1 %1296 }
 0x4dc   :  { %v1332_v48 = vpack.c.bf16 %v1302_v42, %v1301_v41  ;;  %v5180_v41 = vpop.permute.xlu0 %1291 }
 0x4dd   :  { %v1331_v49 = vpack.c.bf16 %v1300_v46, %v1299_v45 }
 0x4df   :  { %v3738_v55 = vpop.f32.mrb[20].mxu1  ;;  %3764 = vmatprep.mubr.bf16.mxu0 %v1331_v49 }
 0x4e0   :  { %v1172_v56 = vpop.f32.mrb[21].mxu1  ;;  %3765 = vmatmul.mubr.bf16.vlgmr.msra.gmra.mrb[32].mxu0 %v1332_v48  ;;  %v1305_v58 = vmul.f32 %v3738_v55, %v5152_v35 }
 0x4e1   :  { %v3739_v57 = vpop.f32.mrb[22].mxu1  ;;  %3781 = vmatpush3.bf16.msra.mxu0 %v4279_v10  ;;  %v1303_v62 = vmul.f32 %v5148_v23, %v1172_v56 }
 0x4e2   :  { %v1306_v59 = vmul.f32 %v3739_v57, %v5154_v38  ;;  %v1175_v60 = vpop.f32.mrb[23].mxu1  ;;  %3782 = vmatprep.subr.bf16.mxu0 %v4280_v51 }
 0x4e3   :  { %v1304_v63 = vmul.f32 %v5150_v24, %v1175_v60  ;;  %v4335_v60 = vld [vmem:[%s5370_s20] sm:$0xff]  }
 0x4e4   :  { %v1334_v1 = vpack.c.bf16 %v1306_v59, %v1305_v58  ;;  %v4286_v59 = vld [vmem:[#allocation13 + $0x38] sm:$0xff]  }
 0x4e5   :  { %v1333_v3 = vpack.c.bf16 %v1304_v63, %v1303_v62  ;;  %3783 = vmatpush3.bf16.msra.mxu0 %v4280_v51  ;;  %v4285_v51 = vld [vmem:[#allocation13 + $0x30] sm:$0xff]   ;;  %v4337_v62 = vld [vmem:[%s5370_s20 + $0x10] sm:$0xff]  }
 0x4e6   :  { %3784 = vmatprep.subr.bf16.mxu0 %v4281_v61  ;;  %v4338_v63 = vld [vmem:[%s5370_s20 + $0x18] sm:$0xff]  }
 0x4e7   :  { %v3742_v33 = vpop.f32.mrb[24].mxu1  ;;  %3768 = vmatprep.mubr.bf16.mxu0 %v1333_v3  ;;  %v4340_v3 = vld [vmem:[%s5370_s20 + $0x28] sm:$0xff]  }
 0x4e8   :  { %v1188_v5 = vpop.f32.mrb[25].mxu1  ;;  %3769 = vmatmul.mubr.bf16.gmra.mrb[36].mxu0 %v1334_v1  ;;  %v1309_v9 = vmul.f32 %v3742_v33, %v5168_v0  ;;  %v4339_v1 = vld [vmem:[%s5370_s20 + $0x20] sm:$0xff]   ;;  %v4342_v33 = vld [vmem:[%s5370_s20 + $0x38] sm:$0xff]  }
 0x4e9   :  { %v3743_v6 = vpop.f32.mrb[26].mxu1  ;;  %3785 = vmatpush3.bf16.msra.mxu0 %v4281_v61  ;;  %v1307_v14 = vmul.f32 %v5160_v50, %v1188_v5  ;;  %v4336_v61 = vld [vmem:[%s5370_s20 + $0x8] sm:$0xff]   ;;  %v4293_v5 = vld [vmem:[%s5376_s8 + $0x30] sm:$0xff]  }
 0x4ea   :  { %v1310_v10 = vmul.f32 %v3743_v6, %v5170_v2  ;;  %v1191_v11 = vpop.f32.mrb[27].mxu1  ;;  %3786 = vmatprep.subr.bf16.mxu0 %v4282_v32  ;;  %3824 = vmatprep.subr.bf16.mxu1 %v4293_v5  ;;  %v4294_v6 = vld [vmem:[%s5376_s8 + $0x38] sm:$0xff]  }
 0x4eb   :  { %v1308_v15 = vmul.f32 %v5162_v53, %v1191_v11  ;;  %3825 = vmatpush3.bf16.msra.mxu1 %v4293_v5 }
 0x4ec   :  { %v1336_v16 = vpack.c.bf16 %v1310_v10, %v1309_v9  ;;  %3826 = vmatprep.subr.bf16.mxu1 %v4294_v6  ;;  %v3314_v9 = vld [vmem:[#allocation16] ss:$0 sm:$0xff] }
 0x4ed   :  { %v1335_v34 = vpack.c.bf16 %v1308_v15, %v1307_v14  ;;  %3787 = vmatpush3.bf16.msra.mxu0 %v4282_v32  ;;  %v4341_v32 = vld [vmem:[%s5370_s20 + $0x30] sm:$0xff]  }
 0x4ee   :  { %3788 = vmatprep.subr.bf16.mxu0 %v4283_v12 }
 0x4ef   :  { %v3746_v39 = vpop.f32.mrb[28].mxu1  ;;  %3772 = vmatprep.mubr.bf16.mxu0 %v1335_v34  ;;  %3827 = vmatpush3.bf16.msra.mxu1 %v4294_v6 }
 0x4f0   :  { %v1204_v42 = vpop.f32.mrb[29].mxu1  ;;  %3773 = vmatmul.mubr.bf16.gmra.mrb[40].mxu0 %v1336_v16  ;;  %v1313_v46 = vmul.f32 %v3746_v39, %v5180_v41 }
 0x4f1   :  { %v3747_v45 = vpop.f32.mrb[30].mxu1  ;;  %3789 = vmatpush3.bf16.msra.mxu0 %v4283_v12  ;;  %v1311_v55 = vmul.f32 %v5172_v8, %v1204_v42 }
 0x4f2   :  { %v1314_v48 = vmul.f32 %v3747_v45, %v5182_v43  ;;  %v1207_v49 = vpop.f32.mrb[31].mxu1  ;;  %3790 = vmatprep.subr.bf16.mxu0 %v4284_v36 }
 0x4f3   :  { %v1312_v56 = vmul.f32 %v5176_v13, %v1207_v49 }
 0x4f4   :  { %v1338_v57 = vpack.c.bf16 %v1314_v48, %v1313_v46 }
 0x4f5   :  { %v1337_v58 = vpack.c.bf16 %v1312_v56, %v1311_v55  ;;  %3791 = vmatpush3.bf16.msra.mxu0 %v4284_v36 }
 0x4f6   :  { %3792 = vmatprep.subr.bf16.mxu0 %v4285_v51 }
 0x4f7   :  { %3776 = vmatprep.mubr.bf16.mxu0 %v1337_v58 }
 0x4f8   :  { %3777 = vmatmul.mubr.bf16.gmra.mrb[44].mxu0 %v1338_v57 }
 0x4f9   :  { %3793 = vmatpush3.bf16.msra.mxu0 %v4285_v51  ;;  %3796 = vmatprep.mubr.bf16.mxu0 %v4335_v60 }
 0x4fa   :  { %3794 = vmatprep.subr.bf16.mxu0 %v4286_v59 }
 0x4fd   :  { %3795 = vmatpush3.bf16.msra.mxu0 %v4286_v59 }
 0x500   :  { %3797 = vmatmul.mubr.bf16.vlgmr.msra.gmra.mrb[32].mxu0 %v4336_v61 }
 0x501   :  { %3800 = vmatprep.mubr.bf16.mxu0 %v4337_v62 }
 0x508   :  { %3801 = vmatmul.mubr.bf16.gmra.mrb[36].mxu0 %v4338_v63 }
 0x509   :  { %3804 = vmatprep.mubr.bf16.mxu0 %v4339_v1 }
 0x510   :  { %3805 = vmatmul.mubr.bf16.gmra.mrb[40].mxu0 %v4340_v3 }
 0x511   :  { %3808 = vmatprep.mubr.bf16.mxu0 %v4341_v32 }
 0x518   :  { %3809 = vmatmul.mubr.bf16.gmra.mrb[44].mxu0 %v4342_v33 }
 0x5d3   :  { %v3798_v10 = vpop.f32.mrb[32].mxu0 }
 0x5d4   :  { %v1654_v11 = vadd.f32 %v3798_v10, %v3314_v9  ;;  %v1582_v12 = vpop.f32.mrb[33].mxu0 }
 0x5d5   :  { %v1652_v14 = vadd.f32 %v3314_v9, %v1582_v12  ;;  %v3799_v15 = vpop.f32.mrb[34].mxu0 }
 0x5d6   :  { %v1655_v16 = vadd.f32 %v3799_v15, %v3314_v9  ;;  %v1585_v34 = vpop.f32.mrb[35].mxu0  ;;  %v1670_v39 = vmax.f32 %v1654_v11, 0.0 }
 0x5d7   :  { %v1653_v36 = vadd.f32 %v3314_v9, %v1585_v34  ;;  %v1668_v45 = vmax.f32 %v1652_v14, 0.0 }
 0x5d8   :  { %v1671_v42 = vmax.f32 %v1655_v16, 0.0 }
 0x5d9   :  { %v1669_v46 = vmax.f32 %v1653_v36, 0.0 }
 0x5da   :  { %v1685_v48 = vpack.c.bf16 %v1671_v42, %v1670_v39 }
 0x5db   :  { %v1684_v49 = vpack.c.bf16 %v1669_v46, %v1668_v45  ;;  %v3802_v51 = vpop.f32.mrb[36].mxu0 }
 0x5dc   :  { %v1658_v55 = vadd.f32 %v3802_v51, %v3314_v9  ;;  %v1598_v56 = vpop.f32.mrb[37].mxu0 }
 0x5dd   :  { %v1656_v57 = vadd.f32 %v3314_v9, %v1598_v56  ;;  %v3803_v58 = vpop.f32.mrb[38].mxu0  ;;  %3828 = vmatprep.mubr.bf16.mxu1 %v1684_v49 }
 0x5de   :  { %v1659_v59 = vadd.f32 %v3803_v58, %v3314_v9  ;;  %v1601_v60 = vpop.f32.mrb[39].mxu0  ;;  %3829 = vmatmul.mubr.bf16.vlgmr.msra.gmra.mrb[32].mxu1 %v1685_v48  ;;  %v1674_v62 = vmax.f32 %v1658_v55, 0.0 }
 0x5df   :  { %v1657_v61 = vadd.f32 %v3314_v9, %v1601_v60  ;;  %v1672_v1 = vmax.f32 %v1656_v57, 0.0 }
 0x5e0   :  { %v1675_v63 = vmax.f32 %v1659_v59, 0.0 }
 0x5e1   :  { %v1673_v3 = vmax.f32 %v1657_v61, 0.0 }
 0x5e2   :  { %v1687_v32 = vpack.c.bf16 %v1675_v63, %v1674_v62 }
 0x5e3   :  { %v1686_v33 = vpack.c.bf16 %v1673_v3, %v1672_v1  ;;  %v3806_v5 = vpop.f32.mrb[40].mxu0 }
 0x5e4   :  { %v1662_v6 = vadd.f32 %v3806_v5, %v3314_v9  ;;  %v1614_v10 = vpop.f32.mrb[41].mxu0  ;;  %v4296_v5 = vld [vmem:[#allocation17 + $0x8] sm:$0xff]  }
 0x5e5   :  { %v1660_v11 = vadd.f32 %v3314_v9, %v1614_v10  ;;  %v3807_v12 = vpop.f32.mrb[42].mxu0  ;;  %3832 = vmatprep.mubr.bf16.mxu1 %v1686_v33  ;;  %v4295_v33 = vld [vmem:[#allocation17] sm:$0xff]  }
 0x5e6   :  { %v1663_v14 = vadd.f32 %v3807_v12, %v3314_v9  ;;  %v1617_v15 = vpop.f32.mrb[43].mxu0  ;;  %3833 = vmatmul.mubr.bf16.gmra.mrb[36].mxu1 %v1687_v32  ;;  %v1678_v34 = vmax.f32 %v1662_v6, 0.0  ;;  %v4343_v32 = vld [vmem:[%s5371_s4] sm:$0xff]   ;;  %3876 = vmatprep.subr.bf16.mxu0 %v4295_v33  ;;  %v4299_v10 = vld [vmem:[#allocation17 + $0x20] sm:$0xff]  }
 0x5e7   :  { %v1661_v16 = vadd.f32 %v3314_v9, %v1617_v15  ;;  %v1676_v39 = vmax.f32 %v1660_v11, 0.0  ;;  %3877 = vmatpush3.bf16.msra.mxu0 %v4295_v33  ;;  %v4297_v6 = vld [vmem:[#allocation17 + $0x10] sm:$0xff]   ;;  %v4300_v11 = vld [vmem:[#allocation17 + $0x28] sm:$0xff]  }
 0x5e8   :  { %v1679_v36 = vmax.f32 %v1663_v14, 0.0  ;;  %3878 = vmatprep.subr.bf16.mxu0 %v4296_v5  ;;  %v4301_v12 = vld [vmem:[#allocation17 + $0x30] sm:$0xff]  }
 0x5e9   :  { %v1677_v42 = vmax.f32 %v1661_v16, 0.0  ;;  %v3315_v14 = vld [vmem:[%s5377_s18] ss:$0 sm:$0xff] }
 0x5ea   :  { %v1689_v45 = vpack.c.bf16 %v1679_v36, %v1678_v34 }
 0x5eb   :  { %v1688_v46 = vpack.c.bf16 %v1677_v42, %v1676_v39  ;;  %v3810_v48 = vpop.f32.mrb[44].mxu0  ;;  %3879 = vmatpush3.bf16.msra.mxu0 %v4296_v5 }
 0x5ec   :  { %v1666_v49 = vadd.f32 %v3810_v48, %v3314_v9  ;;  %v1630_v51 = vpop.f32.mrb[45].mxu0  ;;  %3880 = vmatprep.subr.bf16.mxu0 %v4297_v6 }
 0x5ed   :  { %v1664_v55 = vadd.f32 %v3314_v9, %v1630_v51  ;;  %v3811_v56 = vpop.f32.mrb[46].mxu0  ;;  %3836 = vmatprep.mubr.bf16.mxu1 %v1688_v46 }
 0x5ee   :  { %v1667_v57 = vadd.f32 %v3811_v56, %v3314_v9  ;;  %v1633_v58 = vpop.f32.mrb[47].mxu0  ;;  %3837 = vmatmul.mubr.bf16.gmra.mrb[40].mxu1 %v1689_v45  ;;  %v1682_v60 = vmax.f32 %v1666_v49, 0.0 }
 0x5ef   :  { %v1665_v59 = vadd.f32 %v3314_v9, %v1633_v58  ;;  %v1680_v62 = vmax.f32 %v1664_v55, 0.0  ;;  %v4298_v9 = vld [vmem:[#allocation17 + $0x18] sm:$0xff]   ;;  %3881 = vmatpush3.bf16.msra.mxu0 %v4297_v6 }
 0x5f0   :  { %v1683_v61 = vmax.f32 %v1667_v57, 0.0  ;;  %3882 = vmatprep.subr.bf16.mxu0 %v4298_v9 }
 0x5f1   :  { %v1681_v63 = vmax.f32 %v1665_v59, 0.0 }
 0x5f2   :  { %v1691_v1 = vpack.c.bf16 %v1683_v61, %v1682_v60 }
 0x5f3   :  { %v1690_v3 = vpack.c.bf16 %v1681_v63, %v1680_v62  ;;  %3883 = vmatpush3.bf16.msra.mxu0 %v4298_v9 }
 0x5f4   :  { %3884 = vmatprep.subr.bf16.mxu0 %v4299_v10 }
 0x5f5   :  { %3840 = vmatprep.mubr.bf16.mxu1 %v1690_v3 }
 0x5f6   :  { %3841 = vmatmul.mubr.bf16.gmra.mrb[44].mxu1 %v1691_v1 }
 0x5f7   :  { %3860 = vmatprep.mubr.bf16.mxu1 %v4343_v32  ;;  %3885 = vmatpush3.bf16.msra.mxu0 %v4299_v10 }
 0x5f8   :  { %3886 = vmatprep.subr.bf16.mxu0 %v4300_v11 }
 0x5fb   :  { %3887 = vmatpush3.bf16.msra.mxu0 %v4300_v11 }
 0x5fc   :  { %3888 = vmatprep.subr.bf16.mxu0 %v4301_v12 }
 0x5ff   :  { %3889 = vmatpush3.bf16.msra.mxu0 %v4301_v12 }
 0x6b1   :  { %v3830_v15 = vpop.f32.mrb[32].mxu1 }
 0x6b2   :  { %v1806_v16 = vadd.f32 %v3830_v15, %v3315_v14  ;;  %v1797_v34 = vpop.f32.mrb[33].mxu1 }
 0x6b3   :  { %v1798_v36 = vadd.f32 %v3315_v14, %v1797_v34  ;;  %v3831_v39 = vpop.f32.mrb[34].mxu1 }
 0x6b4   :  { %v1809_v42 = vadd.f32 %v3831_v39, %v3315_v14  ;;  %v1800_v45 = vpop.f32.mrb[35].mxu1  ;;  %v1862_v48 = vmax.f32 %v1806_v16, 0.0 }
 0x6b5   :  { %v1801_v46 = vadd.f32 %v3315_v14, %v1800_v45  ;;  %v1860_v51 = vmax.f32 %v1798_v36, 0.0 }
 0x6b6   :  { %v1863_v49 = vmax.f32 %v1809_v42, 0.0 }
 0x6b7   :  { %v1861_v55 = vmax.f32 %v1801_v46, 0.0 }
 0x6b8   :  { %v5200_v56 = vpack.c.bf16 %v1863_v49, %v1862_v48 }
 0x6b9   :  { %v5202_v57 = vpack.c.bf16 %v1861_v55, %v1860_v51  ;;  %v3834_v58 = vpop.f32.mrb[36].mxu1 }
 0x6ba   :  { %v1822_v59 = vadd.f32 %v3834_v58, %v3315_v14  ;;  %v1813_v60 = vpop.f32.mrb[37].mxu1 }
 0x6bb   :  { %v1814_v61 = vadd.f32 %v3315_v14, %v1813_v60  ;;  %v3835_v62 = vpop.f32.mrb[38].mxu1  ;;  %3844 = vmatprep.subr.bf16.mxu1 %v5202_v57 }
 0x6bc   :  { %v1825_v63 = vadd.f32 %v3835_v62, %v3315_v14  ;;  %v1816_v1 = vpop.f32.mrb[39].mxu1  ;;  %3845 = vmatpush3.bf16.msra.mxu1 %v5202_v57  ;;  %v1866_v32 = vmax.f32 %v1822_v59, 0.0 }
 0x6bd   :  { %v1817_v3 = vadd.f32 %v3315_v14, %v1816_v1  ;;  %3846 = vmatprep.subr.bf16.mxu1 %v5200_v56  ;;  %v1864_v5 = vmax.f32 %v1814_v61, 0.0 }
 0x6be   :  { %v1867_v33 = vmax.f32 %v1825_v63, 0.0 }
 0x6bf   :  { %v1865_v6 = vmax.f32 %v1817_v3, 0.0 }
 0x6c0   :  { %v5207_v9 = vpack.c.bf16 %v1867_v33, %v1866_v32  ;;  %3847 = vmatpush3.bf16.msra.mxu1 %v5200_v56 }
 0x6c1   :  { %v5210_v10 = vpack.c.bf16 %v1865_v6, %v1864_v5  ;;  %v3838_v11 = vpop.f32.mrb[40].mxu1 }
 0x6c2   :  { %v1838_v12 = vadd.f32 %v3838_v11, %v3315_v14  ;;  %v1829_v15 = vpop.f32.mrb[41].mxu1 }
 0x6c3   :  { %v1830_v16 = vadd.f32 %v3315_v14, %v1829_v15  ;;  %v3839_v34 = vpop.f32.mrb[42].mxu1  ;;  %3848 = vmatprep.subr.bf16.mxu1 %v5210_v10  ;;  %v4345_v15 = vld [vmem:[%s5371_s4 + $0x10] sm:$0xff]  }
 0x6c4   :  { %v1841_v36 = vadd.f32 %v3839_v34, %v3315_v14  ;;  %v1832_v39 = vpop.f32.mrb[43].mxu1  ;;  %3849 = vmatpush3.bf16.msra.mxu1 %v5210_v10  ;;  %v1870_v45 = vmax.f32 %v1838_v12, 0.0  ;;  %v4347_v34 = vld [vmem:[%s5371_s4 + $0x20] sm:$0xff]  }
 0x6c5   :  { %v1833_v42 = vadd.f32 %v3315_v14, %v1832_v39  ;;  %3850 = vmatprep.subr.bf16.mxu1 %v5207_v9  ;;  %v1868_v48 = vmax.f32 %v1830_v16, 0.0  ;;  %v4346_v16 = vld [vmem:[%s5371_s4 + $0x18] sm:$0xff]   ;;  %v4349_v39 = vld [vmem:[%s5371_s4 + $0x30] sm:$0xff]  }
 0x6c6   :  { %v1871_v46 = vmax.f32 %v1841_v36, 0.0  ;;  %v4348_v36 = vld [vmem:[%s5371_s4 + $0x28] sm:$0xff]  }
 0x6c7   :  { %v1869_v49 = vmax.f32 %v1833_v42, 0.0  ;;  %v4350_v42 = vld [vmem:[%s5371_s4 + $0x38] sm:$0xff]  }
 0x6c8   :  { %v5215_v51 = vpack.c.bf16 %v1871_v46, %v1870_v45  ;;  %3851 = vmatpush3.bf16.msra.mxu1 %v5207_v9  ;;  %v4302_v45 = vld [vmem:[#allocation17 + $0x38] sm:$0xff]   ;;  %v4303_v46 = vld [vmem:[#allocation19] sm:$0xff]  }
 0x6c9   :  { %v5218_v55 = vpack.c.bf16 %v1869_v49, %v1868_v48  ;;  %v3842_v58 = vpop.f32.mrb[44].mxu1  ;;  %3890 = vmatprep.subr.bf16.mxu0 %v4302_v45  ;;  %v4304_v48 = vld [vmem:[#allocation19 + $0x8] sm:$0xff]   ;;  %v4305_v49 = vld [vmem:[#allocation19 + $0x10] sm:$0xff]  }
 0x6ca   :  { %v1854_v59 = vadd.f32 %v3842_v58, %v3315_v14  ;;  %v1845_v60 = vpop.f32.mrb[45].mxu1  ;;  %3891 = vmatpush3.bf16.msra.mxu0 %v4302_v45  ;;  %v4306_v58 = vld [vmem:[#allocation19 + $0x18] sm:$0xff]  }
 0x6cb   :  { %v1846_v61 = vadd.f32 %v3315_v14, %v1845_v60  ;;  %v3843_v62 = vpop.f32.mrb[46].mxu1  ;;  %3852 = vmatprep.subr.bf16.mxu1 %v5218_v55  ;;  %v4308_v60 = vld [vmem:[#allocation19 + $0x28] sm:$0xff]  }
 0x6cc   :  { %v1857_v63 = vadd.f32 %v3843_v62, %v3315_v14  ;;  %v1848_v1 = vpop.f32.mrb[47].mxu1  ;;  %3853 = vmatpush3.bf16.msra.mxu1 %v5218_v55  ;;  %v1874_v32 = vmax.f32 %v1854_v59, 0.0  ;;  %v4307_v59 = vld [vmem:[#allocation19 + $0x20] sm:$0xff]  }
 0x6cd   :  { %v1849_v3 = vadd.f32 %v3315_v14, %v1848_v1  ;;  %3854 = vmatprep.subr.bf16.mxu1 %v5215_v51  ;;  %v1872_v5 = vmax.f32 %v1846_v61, 0.0  ;;  %v4344_v14 = vld [vmem:[%s5371_s4 + $0x8] sm:$0xff]  }
 0x6ce   :  { %v1875_v33 = vmax.f32 %v1857_v63, 0.0 }
 0x6cf   :  { %v1873_v6 = vmax.f32 %v1849_v3, 0.0 }
 0x6d0   :  { %v5223_v11 = vpack.c.bf16 %v1875_v33, %v1874_v32  ;;  %3855 = vmatpush3.bf16.msra.mxu1 %v5215_v51 }
 0x6d1   :  { %v5226_v12 = vpack.c.bf16 %v1873_v6, %v1872_v5 }
 0x6d3   :  { %3856 = vmatprep.subr.bf16.mxu1 %v5226_v12 }
 0x6d4   :  { %3857 = vmatpush3.bf16.msra.mxu1 %v5226_v12 }
 0x6d5   :  { %3858 = vmatprep.subr.bf16.mxu1 %v5223_v11 }
 0x6d8   :  { %3859 = vmatpush3.bf16.msra.mxu1 %v5223_v11 }
 0x6d9   :  { %3908 = vmatprep.subr.bf16.mxu1 %v4303_v46 }
 0x6db   :  { %3861 = vmatmul.mubr.bf16.vlgmr.msra.gmra.mrb[48].mxu1 %v4344_v14 }
 0x6dc   :  { %3864 = vmatprep.mubr.bf16.mxu1 %v4345_v15  ;;  %3909 = vmatpush3.bf16.msra.mxu1 %v4303_v46 }
 0x6dd   :  { %3910 = vmatprep.subr.bf16.mxu1 %v4304_v48 }
 0x6e0   :  { %3911 = vmatpush3.bf16.msra.mxu1 %v4304_v48 }
 0x6e1   :  { %3912 = vmatprep.subr.bf16.mxu1 %v4305_v49 }
 0x6e3   :  { %3865 = vmatmul.mubr.bf16.gmra.mrb[52].mxu1 %v4346_v16 }
 0x6e4   :  { %3868 = vmatprep.mubr.bf16.mxu1 %v4347_v34  ;;  %3913 = vmatpush3.bf16.msra.mxu1 %v4305_v49 }
 0x6e5   :  { %3914 = vmatprep.subr.bf16.mxu1 %v4306_v58 }
 0x6e8   :  { %3915 = vmatpush3.bf16.msra.mxu1 %v4306_v58 }
 0x6e9   :  { %3916 = vmatprep.subr.bf16.mxu1 %v4307_v59 }
 0x6eb   :  { %3869 = vmatmul.mubr.bf16.gmra.mrb[56].mxu1 %v4348_v36 }
 0x6ec   :  { %3872 = vmatprep.mubr.bf16.mxu1 %v4349_v39  ;;  %3917 = vmatpush3.bf16.msra.mxu1 %v4307_v59 }
 0x6ed   :  { %3918 = vmatprep.subr.bf16.mxu1 %v4308_v60 }
 0x6f0   :  { %3919 = vmatpush3.bf16.msra.mxu1 %v4308_v60 }
 0x6f3   :  { %3873 = vmatmul.mubr.bf16.gmra.mrb[60].mxu1 %v4350_v42 }
 0x7ae   :  { %v3862_v61 = vpop.f32.mrb[48].mxu1 }
 0x7af   :  { %v1918_v62 = vpop.f32.mrb[49].mxu1 }
 0x7b0   :  { %v3863_v63 = vpop.f32.mrb[50].mxu1 }
 0x7b1   :  { %v1982_v1 = vpack.c.bf16 %v3863_v63, %v3862_v61  ;;  %v1921_v3 = vpop.f32.mrb[51].mxu1  ;;  %v4310_v63 = vld [vmem:[#allocation19 + $0x38] sm:$0xff]  }
 0x7b2   :  { %v1981_v32 = vpack.c.bf16 %v1921_v3, %v1918_v62  ;;  %v4309_v62 = vld [vmem:[#allocation19 + $0x30] sm:$0xff]  }
 0x7b3   :  { %3920 = vmatprep.subr.bf16.mxu1 %v4309_v62 }
 0x7b4   :  { %3892 = vmatprep.mubr.bf16.mxu0 %v1981_v32  ;;  %3921 = vmatpush3.bf16.msra.mxu1 %v4309_v62 }
 0x7b5   :  { %3893 = vmatmul.mubr.bf16.vlgmr.msra.gmra.mrb[48].mxu0 %v1982_v1  ;;  %3922 = vmatprep.subr.bf16.mxu1 %v4310_v63  ;;  %v3324_v1 = vld [vmem:[%s5378_s22] ss:$0 sm:$0xff] }
 0x7b6   :  { %v3866_v33 = vpop.f32.mrb[52].mxu1 }
 0x7b7   :  { %v1934_v5 = vpop.f32.mrb[53].mxu1 }
 0x7b8   :  { %v3867_v6 = vpop.f32.mrb[54].mxu1  ;;  %3923 = vmatpush3.bf16.msra.mxu1 %v4310_v63 }
 0x7b9   :  { %v1984_v14 = vpack.c.bf16 %v3867_v6, %v3866_v33  ;;  %v1937_v15 = vpop.f32.mrb[55].mxu1 }
 0x7ba   :  { %v1983_v16 = vpack.c.bf16 %v1937_v15, %v1934_v5 }
 0x7bc   :  { %3896 = vmatprep.mubr.bf16.mxu0 %v1983_v16 }
 0x7bd   :  { %3897 = vmatmul.mubr.bf16.gmra.mrb[52].mxu0 %v1984_v14 }
 0x7be   :  { %v3870_v34 = vpop.f32.mrb[56].mxu1 }
 0x7bf   :  { %v1950_v36 = vpop.f32.mrb[57].mxu1 }
 0x7c0   :  { %v3871_v39 = vpop.f32.mrb[58].mxu1 }
 0x7c1   :  { %v1986_v42 = vpack.c.bf16 %v3871_v39, %v3870_v34  ;;  %v1953_v45 = vpop.f32.mrb[59].mxu1 }
 0x7c2   :  { %v1985_v46 = vpack.c.bf16 %v1953_v45, %v1950_v36 }
 0x7c4   :  { %3900 = vmatprep.mubr.bf16.mxu0 %v1985_v46 }
 0x7c5   :  { %3901 = vmatmul.mubr.bf16.gmra.mrb[56].mxu0 %v1986_v42 }
 0x7c6   :  { %v3874_v48 = vpop.f32.mrb[60].mxu1 }
 0x7c7   :  { %v1966_v49 = vpop.f32.mrb[61].mxu1 }
 0x7c8   :  { %v3875_v58 = vpop.f32.mrb[62].mxu1 }
 0x7c9   :  { %v1988_v59 = vpack.c.bf16 %v3875_v58, %v3874_v48  ;;  %v1969_v60 = vpop.f32.mrb[63].mxu1 }
 0x7ca   :  { %v1987_v61 = vpack.c.bf16 %v1969_v60, %v1966_v49 }
 0x7cc   :  { %3904 = vmatprep.mubr.bf16.mxu0 %v1987_v61 }
 0x7cd   :  { %3905 = vmatmul.mubr.bf16.gmra.mrb[60].mxu0 %v1988_v59 }
 0x7ce   :  { %3956 = vmatprep.mubr.bf16.mxu0 %v5046_v19 }
 0x888   :  { %v3894_v3 = vpop.f32.mrb[48].mxu0 }
 0x889   :  { %v2103_v32 = vadd.f32 %v3894_v3, %v3324_v1  ;;  %v2094_v33 = vpop.f32.mrb[49].mxu0 }
 0x88a   :  { %v2095_v5 = vadd.f32 %v3324_v1, %v2094_v33  ;;  %v3895_v6 = vpop.f32.mrb[50].mxu0 }
 0x88b   :  { %v2106_v14 = vadd.f32 %v3895_v6, %v3324_v1  ;;  %v2097_v15 = vpop.f32.mrb[51].mxu0  ;;  %v2159_v34 = vmax.f32 %v2103_v32, 0.0 }
 0x88c   :  { %v2098_v16 = vadd.f32 %v3324_v1, %v2097_v15  ;;  %v2157_v39 = vmax.f32 %v2095_v5, 0.0 }
 0x88d   :  { %v2160_v36 = vmax.f32 %v2106_v14, 0.0 }
 0x88e   :  { %v2158_v42 = vmax.f32 %v2098_v16, 0.0 }
 0x88f   :  { %v2174_v19 = vpack.c.bf16 %v2160_v36, %v2159_v34 }
 0x890   :  { %v2173_v45 = vpack.c.bf16 %v2158_v42, %v2157_v39  ;;  %v3898_v46 = vpop.f32.mrb[52].mxu0 }
 0x891   :  { %v2119_v48 = vadd.f32 %v3898_v46, %v3324_v1  ;;  %v2110_v49 = vpop.f32.mrb[53].mxu0 }
 0x892   :  { %v2111_v58 = vadd.f32 %v3324_v1, %v2110_v49  ;;  %v3899_v59 = vpop.f32.mrb[54].mxu0  ;;  %3924 = vmatprep.mubr.bf16.mxu1 %v2173_v45 }
 0x893   :  { %v2122_v60 = vadd.f32 %v3899_v59, %v3324_v1  ;;  %v2113_v61 = vpop.f32.mrb[55].mxu0  ;;  %3925 = vmatmul.mubr.bf16.vlgmr.msra.gmra.mrb[64].mxu1 %v2174_v19  ;;  %v2163_v63 = vmax.f32 %v2119_v48, 0.0 }
 0x894   :  { %v2114_v62 = vadd.f32 %v3324_v1, %v2113_v61  ;;  %v2161_v33 = vmax.f32 %v2111_v58, 0.0 }
 0x895   :  { %v2164_v3 = vmax.f32 %v2122_v60, 0.0 }
 0x896   :  { %v2162_v6 = vmax.f32 %v2114_v62, 0.0 }
 0x897   :  { %v2176_v32 = vpack.c.bf16 %v2164_v3, %v2163_v63 }
 0x898   :  { %v2175_v14 = vpack.c.bf16 %v2162_v6, %v2161_v33  ;;  %v3902_v5 = vpop.f32.mrb[56].mxu0 }
 0x899   :  { %v2135_v15 = vadd.f32 %v3902_v5, %v3324_v1  ;;  %v2126_v16 = vpop.f32.mrb[57].mxu0 }
 0x89a   :  { %v2127_v34 = vadd.f32 %v3324_v1, %v2126_v16  ;;  %v3903_v36 = vpop.f32.mrb[58].mxu0  ;;  %3928 = vmatprep.mubr.bf16.mxu1 %v2175_v14 }
 0x89b   :  { %v2138_v39 = vadd.f32 %v3903_v36, %v3324_v1  ;;  %v2129_v42 = vpop.f32.mrb[59].mxu0  ;;  %3929 = vmatmul.mubr.bf16.gmra.mrb[68].mxu1 %v2176_v32  ;;  %v2167_v46 = vmax.f32 %v2135_v15, 0.0 }
 0x89c   :  { %v2130_v45 = vadd.f32 %v3324_v1, %v2129_v42  ;;  %v2165_v19 = vmax.f32 %v2127_v34, 0.0  ;;  %v4311_v34 = vld [vmem:[#allocation22] sm:$0xff]   ;;  %v4312_v42 = vld [vmem:[#allocation22 + $0x8] sm:$0xff]  }
 0x89d   :  { %v2168_v49 = vmax.f32 %v2138_v39, 0.0  ;;  %3972 = vmatprep.subr.bf16.mxu1 %v4311_v34 }
 0x89e   :  { %v2166_v59 = vmax.f32 %v2130_v45, 0.0  ;;  %3973 = vmatpush3.bf16.msra.mxu1 %v4311_v34  ;;  %v4313_v45 = vld [vmem:[#allocation22 + $0x10] sm:$0xff]  }
 0x89f   :  { %v2178_v48 = vpack.c.bf16 %v2168_v49, %v2167_v46  ;;  %3974 = vmatprep.subr.bf16.mxu1 %v4312_v42  ;;  %v4314_v46 = vld [vmem:[#allocation22 + $0x18] sm:$0xff]   ;;  %v4316_v49 = vld [vmem:[#allocation22 + $0x28] sm:$0xff]  }
 0x8a0   :  { %v2177_v60 = vpack.c.bf16 %v2166_v59, %v2165_v19  ;;  %v3906_v58 = vpop.f32.mrb[60].mxu0  ;;  %v5242_v19 = vld [vmem:[%s5379_s6] ss:$0 sm:$0xff] }
 0x8a1   :  { %v2151_v61 = vadd.f32 %v3906_v58, %v3324_v1  ;;  %v2142_v62 = vpop.f32.mrb[61].mxu0  ;;  %v5245_v59 = vld [vmem:[%s5380_s23] ss:$0 sm:$0xff] }
 0x8a2   :  { %v2143_v63 = vadd.f32 %v3324_v1, %v2142_v62  ;;  %v3907_v3 = vpop.f32.mrb[62].mxu0  ;;  %3932 = vmatprep.mubr.bf16.mxu1 %v2177_v60  ;;  %3975 = vmatpush3.bf16.msra.mxu1 %v4312_v42  ;;  %v2358_v60 = vmul.f32 %v5245_v59, %v5051_v27  ;;  %v2356_v62 = vmul.f32 %v5245_v59, %v5049_v26 }
 0x8a3   :  { %v2154_v33 = vadd.f32 %v3907_v3, %v3324_v1  ;;  %v2145_v6 = vpop.f32.mrb[63].mxu0  ;;  %3933 = vmatmul.mubr.bf16.gmra.mrb[72].mxu1 %v2178_v48  ;;  %v2171_v5 = vmax.f32 %v2151_v61, 0.0  ;;  %3976 = vmatprep.subr.bf16.mxu1 %v4313_v45  ;;  %v2362_v42 = vmul.f32 %v5245_v59, %v5070_v37  ;;  %v2361_v37 = vmul.f32 %v5245_v59, %v5059_v31 }
 0x8a4   :  { %v2146_v14 = vadd.f32 %v3324_v1, %v2145_v6  ;;  %v2169_v32 = vmax.f32 %v2143_v63, 0.0  ;;  %v4315_v1 = vld [vmem:[#allocation22 + $0x20] sm:$0xff]  }
 0x8a5   :  { %v2172_v16 = vmax.f32 %v2154_v33, 0.0  ;;  %v2359_v33 = vmul.f32 %v5245_v59, %v5055_v29 }
 0x8a6   :  { %v2170_v36 = vmax.f32 %v2146_v14, 0.0  ;;  %3977 = vmatpush3.bf16.msra.mxu1 %v4313_v45 }
 0x8a7   :  { %v2180_v15 = vpack.c.bf16 %v2172_v16, %v2171_v5  ;;  %3978 = vmatprep.subr.bf16.mxu1 %v4314_v46  ;;  %v2357_v16 = vmul.f32 %v5245_v59, %v5053_v28 }
 0x8a8   :  { %v2179_v39 = vpack.c.bf16 %v2170_v36, %v2169_v32 }
 0x8aa   :  { %3936 = vmatprep.mubr.bf16.mxu1 %v2179_v39  ;;  %3979 = vmatpush3.bf16.msra.mxu1 %v4314_v46  ;;  %v2360_v46 = vmul.f32 %v5245_v59, %v5057_v30 }
 0x8ab   :  { %3937 = vmatmul.mubr.bf16.gmra.mrb[76].mxu1 %v2180_v15  ;;  %3980 = vmatprep.subr.bf16.mxu1 %v4315_v1 }
 0x8ae   :  { %3981 = vmatpush3.bf16.msra.mxu1 %v4315_v1 }
 0x8af   :  { %3982 = vmatprep.subr.bf16.mxu1 %v4316_v49 }
 0x8b2   :  { %3983 = vmatpush3.bf16.msra.mxu1 %v4316_v49  ;;  %v2363_v49 = vmul.f32 %v5245_v59, %v5073_v40  ;;  %v2366_v40 = vmul.f32 %v5245_v59, %v5098_v4  ;;  %v2365_v4 = vmul.f32 %v5245_v59, %v5084_v54 }
 0x966   :  { %v3926_v48 = vpop.f32.mrb[64].mxu1 }
 0x967   :  { %v2295_v58 = vadd.f32 %v3926_v48, %v5242_v19  ;;  %v2286_v61 = vpop.f32.mrb[65].mxu1 }
 0x968   :  { %v2287_v63 = vadd.f32 %v5242_v19, %v2286_v61  ;;  %v3927_v3 = vpop.f32.mrb[66].mxu1 }
 0x969   :  { %v2374_v6 = vmul.f32 %v2358_v60, %v2295_v58  ;;  %v2298_v14 = vadd.f32 %v3927_v3, %v5242_v19  ;;  %v2289_v5 = vpop.f32.mrb[67].mxu1 }
 0x96a   :  { %v2372_v27 = vmul.f32 %v2356_v62, %v2287_v63  ;;  %v2290_v32 = vadd.f32 %v5242_v19, %v2289_v5 }
 0x96b   :  { %v2375_v36 = vmul.f32 %v2359_v33, %v2298_v14 }
 0x96c   :  { %v2373_v15 = vmul.f32 %v2357_v16, %v2290_v32  ;;  %v2364_v16 = vmul.f32 %v5245_v59, %v5082_v52  ;;  %v2367_v32 = vmul.f32 %v5245_v59, %v5100_v7  ;;  %v2370_v7 = vmul.f32 %v5245_v59, %v5118_v44 }
 0x96d   :  { %v2389_v39 = vpack.c.bf16 %v2375_v36, %v2374_v6  ;;  %v2369_v44 = vmul.f32 %v5245_v59, %v5115_v25  ;;  %v4354_v25 = vld [vmem:[#allocation2 + $0x20] sm:$0xff]  }
 0x96e   :  { %v3930_v26 = vpop.f32.mrb[68].mxu1  ;;  %v2388_v34 = vpack.c.bf16 %v2373_v15, %v2372_v27 }
 0x96f   :  { %v2311_v29 = vadd.f32 %v3930_v26, %v5242_v19  ;;  %v2302_v45 = vpop.f32.mrb[69].mxu1 }
 0x970   :  { %v2303_v1 = vadd.f32 %v5242_v19, %v2302_v45  ;;  %v3931_v28 = vpop.f32.mrb[70].mxu1  ;;  %3940 = vmatprep.subr.bf16.mxu0 %v2388_v34 }
 0x971   :  { %v2378_v48 = vmul.f32 %v2362_v42, %v2311_v29  ;;  %v2314_v60 = vadd.f32 %v3931_v28, %v5242_v19  ;;  %v2305_v58 = vpop.f32.mrb[71].mxu1  ;;  %3941 = vmatpush3.bf16.msra.mxu0 %v2388_v34 }
 0x972   :  { %v2376_v61 = vmul.f32 %v2360_v46, %v2303_v1  ;;  %v2306_v62 = vadd.f32 %v5242_v19, %v2305_v58  ;;  %3942 = vmatprep.subr.bf16.mxu0 %v2389_v39 }
 0x973   :  { %v2379_v30 = vmul.f32 %v2363_v49, %v2314_v60  ;;  %v2368_v49 = vmul.f32 %v5245_v59, %v5106_v18  ;;  %v2371_v60 = vmul.f32 %v5245_v59, %v5121_v47  ;;  %v4351_v47 = vld [vmem:[#allocation2 + $0x8] sm:$0xff]  }
 0x974   :  { %v2377_v63 = vmul.f32 %v2361_v37, %v2306_v62  ;;  %v4355_v59 = vld [vmem:[#allocation2 + $0x28] sm:$0xff]  }
 0x975   :  { %3943 = vmatpush3.bf16.msra.mxu0 %v2389_v39  ;;  %v2391_v3 = vpack.c.bf16 %v2379_v30, %v2378_v48 }
 0x976   :  { %v3934_v33 = vpop.f32.mrb[72].mxu1  ;;  %v2390_v6 = vpack.c.bf16 %v2377_v63, %v2376_v61 }
 0x977   :  { %v2327_v14 = vadd.f32 %v3934_v33, %v5242_v19  ;;  %v2318_v5 = vpop.f32.mrb[73].mxu1 }
 0x978   :  { %v2319_v31 = vadd.f32 %v5242_v19, %v2318_v5  ;;  %v3935_v27 = vpop.f32.mrb[74].mxu1  ;;  %3944 = vmatprep.subr.bf16.mxu0 %v2390_v6  ;;  %v4317_v5 = vld [vmem:[#allocation22 + $0x30] sm:$0xff]  }
 0x979   :  { %v2382_v36 = vmul.f32 %v2366_v40, %v2327_v14  ;;  %v2330_v15 = vadd.f32 %v3935_v27, %v5242_v19  ;;  %v2321_v39 = vpop.f32.mrb[75].mxu1  ;;  %3945 = vmatpush3.bf16.msra.mxu0 %v2390_v6  ;;  %v4352_v6 = vld [vmem:[#allocation2 + $0x10] sm:$0xff]   ;;  %v4353_v40 = vld [vmem:[#allocation2 + $0x18] sm:$0xff]   ;;  %3984 = vmatprep.subr.bf16.mxu1 %v4317_v5 }
 0x97a   :  { %v2380_v26 = vmul.f32 %v2364_v16, %v2319_v31  ;;  %v2322_v34 = vadd.f32 %v5242_v19, %v2321_v39  ;;  %3946 = vmatprep.subr.bf16.mxu0 %v2391_v3  ;;  %v4357_v14 = vld [vmem:[#allocation2 + $0x38] sm:$0xff]   ;;  %3985 = vmatpush3.bf16.msra.mxu1 %v4317_v5  ;;  %v4318_v16 = vld [vmem:[#allocation22 + $0x38] sm:$0xff]   ;;  %v4319_v31 = vld [vmem:[#allocation20] sm:$0xff]  }
 0x97b   :  { %v2383_v52 = vmul.f32 %v2367_v32, %v2330_v15  ;;  %3986 = vmatprep.subr.bf16.mxu1 %v4318_v16  ;;  %v4327_v27 = vld [vmem:[#allocation23] sm:$0xff]   ;;  %v4328_v32 = vld [vmem:[#allocation23 + $0x8] sm:$0xff]   ;;  %v4330_v15 = vld [vmem:[#allocation23 + $0x18] sm:$0xff]  }
 0x97c   :  { %v2381_v42 = vmul.f32 %v2365_v4, %v2322_v34  ;;  %v4331_v39 = vld [vmem:[#allocation23 + $0x20] sm:$0xff]   ;;  %v4332_v4 = vld [vmem:[#allocation23 + $0x28] sm:$0xff]  }
 0x97d   :  { %3947 = vmatpush3.bf16.msra.mxu0 %v2391_v3  ;;  %v2393_v29 = vpack.c.bf16 %v2383_v52, %v2382_v36  ;;  %v4329_v36 = vld [vmem:[#allocation23 + $0x10] sm:$0xff]  }
 0x97e   :  { %v3938_v45 = vpop.f32.mrb[76].mxu1  ;;  %v2392_v46 = vpack.c.bf16 %v2381_v42, %v2380_v26  ;;  %3987 = vmatpush3.bf16.msra.mxu1 %v4318_v16 }
 0x97f   :  { %v2343_v1 = vadd.f32 %v3938_v45, %v5242_v19  ;;  %v2334_v28 = vpop.f32.mrb[77].mxu1  ;;  %4004 = vmatprep.subr.bf16.mxu1 %v4319_v31 }
 0x980   :  { %v2335_v54 = vadd.f32 %v5242_v19, %v2334_v28  ;;  %v3939_v48 = vpop.f32.mrb[78].mxu1  ;;  %3948 = vmatprep.subr.bf16.mxu0 %v2392_v46 }
 0x981   :  { %v2386_v58 = vmul.f32 %v2370_v7, %v2343_v1  ;;  %v2346_v37 = vadd.f32 %v3939_v48, %v5242_v19  ;;  %v2337_v61 = vpop.f32.mrb[79].mxu1  ;;  %3949 = vmatpush3.bf16.msra.mxu0 %v2392_v46 }
 0x982   :  { %v2384_v62 = vmul.f32 %v2368_v49, %v2335_v54  ;;  %v2338_v30 = vadd.f32 %v5242_v19, %v2337_v61  ;;  %3950 = vmatprep.subr.bf16.mxu0 %v2393_v29  ;;  %v4356_v19 = vld [vmem:[#allocation2 + $0x30] sm:$0xff]  }
 0x983   :  { %v2387_v18 = vmul.f32 %v2371_v60, %v2346_v37  ;;  %v4320_v49 = vld [vmem:[#allocation20 + $0x8] sm:$0xff]  }
 0x984   :  { %v2385_v63 = vmul.f32 %v2369_v44, %v2338_v30 }
 0x985   :  { %3951 = vmatpush3.bf16.msra.mxu0 %v2393_v29  ;;  %v2395_v3 = vpack.c.bf16 %v2387_v18, %v2386_v58 }
 0x986   :  { %v2394_v33 = vpack.c.bf16 %v2385_v63, %v2384_v62  ;;  %v4322_v62 = vld [vmem:[#allocation20 + $0x18] sm:$0xff]  }
 0x988   :  { %3952 = vmatprep.subr.bf16.mxu0 %v2394_v33 }
 0x989   :  { %3953 = vmatpush3.bf16.msra.mxu0 %v2394_v33 }
 0x98a   :  { %3954 = vmatprep.subr.bf16.mxu0 %v2395_v3 }
 0x98d   :  { %3955 = vmatpush3.bf16.msra.mxu0 %v2395_v3 }
 0x98e   :  { %4036 = vmatprep.subr.bf16.mxu0 %v4327_v27 }
 0x990   :  { %3957 = vmatmul.mubr.bf16.vlgmr.msra.gmra.mrb[64].mxu0 %v4351_v47 }
 0x991   :  { %3960 = vmatprep.mubr.bf16.mxu0 %v4352_v6  ;;  %4037 = vmatpush3.bf16.msra.mxu0 %v4327_v27  ;;  %v4326_v27 = vld [vmem:[#allocation20 + $0x38] sm:$0xff]  }
 0x992   :  { %4038 = vmatprep.subr.bf16.mxu0 %v4328_v32 }
 0x995   :  { %4039 = vmatpush3.bf16.msra.mxu0 %v4328_v32 }
 0x996   :  { %4040 = vmatprep.subr.bf16.mxu0 %v4329_v36 }
 0x998   :  { %3961 = vmatmul.mubr.bf16.gmra.mrb[68].mxu0 %v4353_v40  ;;  %v4324_v40 = vld [vmem:[#allocation20 + $0x28] sm:$0xff]  }
 0x999   :  { %3964 = vmatprep.mubr.bf16.mxu0 %v4354_v25  ;;  %4041 = vmatpush3.bf16.msra.mxu0 %v4329_v36 }
 0x99a   :  { %4042 = vmatprep.subr.bf16.mxu0 %v4330_v15 }
 0x99d   :  { %4043 = vmatpush3.bf16.msra.mxu0 %v4330_v15 }
 0x99e   :  { %4044 = vmatprep.subr.bf16.mxu0 %v4331_v39 }
 0x9a0   :  { %3965 = vmatmul.mubr.bf16.gmra.mrb[72].mxu0 %v4355_v59 }
 0x9a1   :  { %3968 = vmatprep.mubr.bf16.mxu0 %v4356_v19  ;;  %4045 = vmatpush3.bf16.msra.mxu0 %v4331_v39 }
 0x9a2   :  { %4046 = vmatprep.subr.bf16.mxu0 %v4332_v4 }
 0x9a5   :  { %4047 = vmatpush3.bf16.msra.mxu0 %v4332_v4 }
 0x9a8   :  { %3969 = vmatmul.mubr.bf16.gmra.mrb[76].mxu0 %v4357_v14 }
 0xa63   :  { %v3958_v26 = vpop.f32.mrb[64].mxu0 }
 0xa64   :  { %v2430_v34 = vpop.f32.mrb[65].mxu0  ;;  %v2495_v42 = vmul.f32 %v3958_v26, %v5144_v21 }
 0xa65   :  { %v3959_v52 = vpop.f32.mrb[66].mxu0  ;;  %v2493_v46 = vmul.f32 %v2430_v34, %v5140_v17 }
 0xa66   :  { %v2496_v29 = vmul.f32 %v3959_v52, %v5146_v22  ;;  %v2433_v45 = vpop.f32.mrb[67].mxu0  ;;  %v4321_v22 = vld [vmem:[#allocation20 + $0x10] sm:$0xff]  }
 0xa67   :  { %v2494_v7 = vmul.f32 %v2433_v45, %v5142_v20 }
 0xa68   :  { %v2526_v1 = vpack.c.bf16 %v2496_v29, %v2495_v42 }
 0xa69   :  { %v2525_v28 = vpack.c.bf16 %v2494_v7, %v2493_v46 }
 0xa6b   :  { %v3962_v54 = vpop.f32.mrb[68].mxu0  ;;  %3988 = vmatprep.mubr.bf16.mxu1 %v2525_v28 }
 0xa6c   :  { %v2446_v48 = vpop.f32.mrb[69].mxu0  ;;  %3989 = vmatmul.mubr.bf16.vlgmr.msra.gmra.mrb[80].mxu1 %v2526_v1  ;;  %v2499_v58 = vmul.f32 %v3962_v54, %v5152_v35 }
 0xa6d   :  { %v3963_v60 = vpop.f32.mrb[70].mxu0  ;;  %4005 = vmatpush3.bf16.msra.mxu1 %v4319_v31  ;;  %v2497_v17 = vmul.f32 %v2446_v48, %v5148_v23  ;;  %v4323_v23 = vld [vmem:[#allocation20 + $0x20] sm:$0xff]  }
 0xa6e   :  { %v2500_v21 = vmul.f32 %v3963_v60, %v5154_v38  ;;  %v2449_v37 = vpop.f32.mrb[71].mxu0  ;;  %4006 = vmatprep.subr.bf16.mxu1 %v4320_v49 }
 0xa6f   :  { %v2498_v20 = vmul.f32 %v2449_v37, %v5150_v24 }
 0xa70   :  { %v2528_v61 = vpack.c.bf16 %v2500_v21, %v2499_v58 }
 0xa71   :  { %v2527_v44 = vpack.c.bf16 %v2498_v20, %v2497_v17  ;;  %4007 = vmatpush3.bf16.msra.mxu1 %v4320_v49 }
 0xa72   :  { %4008 = vmatprep.subr.bf16.mxu1 %v4321_v22 }
 0xa73   :  { %v3966_v30 = vpop.f32.mrb[72].mxu0  ;;  %3992 = vmatprep.mubr.bf16.mxu1 %v2527_v44 }
 0xa74   :  { %v2462_v18 = vpop.f32.mrb[73].mxu0  ;;  %3993 = vmatmul.mubr.bf16.gmra.mrb[84].mxu1 %v2528_v61  ;;  %v2503_v35 = vmul.f32 %v3966_v30, %v5168_v0 }
 0xa75   :  { %v3967_v63 = vpop.f32.mrb[74].mxu0  ;;  %4009 = vmatpush3.bf16.msra.mxu1 %v4321_v22  ;;  %v2501_v24 = vmul.f32 %v2462_v18, %v5160_v50  ;;  %v4325_v50 = vld [vmem:[#allocation20 + $0x30] sm:$0xff]  }
 0xa76   :  { %v2504_v38 = vmul.f32 %v3967_v63, %v5170_v2  ;;  %v2465_v3 = vpop.f32.mrb[75].mxu0  ;;  %4010 = vmatprep.subr.bf16.mxu1 %v4322_v62 }
 0xa77   :  { %v2502_v33 = vmul.f32 %v2465_v3, %v5162_v53 }
 0xa78   :  { %v2530_v47 = vpack.c.bf16 %v2504_v38, %v2503_v35 }
 0xa79   :  { %v2529_v6 = vpack.c.bf16 %v2502_v33, %v2501_v24  ;;  %4011 = vmatpush3.bf16.msra.mxu1 %v4322_v62 }
 0xa7a   :  { %4012 = vmatprep.subr.bf16.mxu1 %v4323_v23 }
 0xa7b   :  { %v3970_v25 = vpop.f32.mrb[76].mxu0  ;;  %3996 = vmatprep.mubr.bf16.mxu1 %v2529_v6 }
 0xa7c   :  { %v2478_v59 = vpop.f32.mrb[77].mxu0  ;;  %3997 = vmatmul.mubr.bf16.gmra.mrb[88].mxu1 %v2530_v47  ;;  %v2507_v0 = vmul.f32 %v3970_v25, %v5180_v41  ;;  %v3359_v41 = vld [vmem:[%s5381_s26] ss:$0 sm:$0xff] }
 0xa7d   :  { %v3971_v19 = vpop.f32.mrb[78].mxu0  ;;  %4013 = vmatpush3.bf16.msra.mxu1 %v4323_v23  ;;  %v2505_v53 = vmul.f32 %v2478_v59, %v5172_v8  ;;  %v4333_v8 = vld [vmem:[#allocation23 + $0x30] sm:$0xff]  }
 0xa7e   :  { %v2508_v2 = vmul.f32 %v3971_v19, %v5182_v43  ;;  %v2481_v14 = vpop.f32.mrb[79].mxu0  ;;  %4014 = vmatprep.subr.bf16.mxu1 %v4324_v40  ;;  %4048 = vmatprep.subr.bf16.mxu0 %v4333_v8 }
 0xa7f   :  { %v2506_v5 = vmul.f32 %v2481_v14, %v5176_v13  ;;  %4049 = vmatpush3.bf16.msra.mxu0 %v4333_v8  ;;  %v4334_v13 = vld [vmem:[#allocation23 + $0x38] sm:$0xff]  }
 0xa80   :  { %v2532_v16 = vpack.c.bf16 %v2508_v2, %v2507_v0  ;;  %4050 = vmatprep.subr.bf16.mxu0 %v4334_v13 }
 0xa81   :  { %v2531_v31 = vpack.c.bf16 %v2506_v5, %v2505_v53  ;;  %4015 = vmatpush3.bf16.msra.mxu1 %v4324_v40  ;;  %v4752_v53 = vmov 0.0   ;;  %v3110_v5 = vld [vmem:[%s4899_s9] sm:$0xff] }
 0xa82   :  { %4016 = vmatprep.subr.bf16.mxu1 %v4325_v50 }
 0xa83   :  { %4000 = vmatprep.mubr.bf16.mxu1 %v2531_v31  ;;  %4051 = vmatpush3.bf16.msra.mxu0 %v4334_v13  ;;  %v3112_v31 = vld [vmem:[%s4899_s9 + $0x10] sm:$0xff]  ;;  %v3113_v13 = vld [vmem:[%s4899_s9 + $0x18] sm:$0xff] }
 0xa84   :  { %4001 = vmatmul.mubr.bf16.gmra.mrb[92].mxu1 %v2532_v16  ;;  %4068 = vmatprep.subr.bf16.mxu0 %v4752_v53  ;;  %v3111_v16 = vld [vmem:[%s4899_s9 + $0x8] sm:$0xff] }
 0xa85   :  { %4017 = vmatpush3.bf16.msra.mxu1 %v4325_v50  ;;  %4020 = vmatprep.mubr.bf16.mxu1 %v5202_v57  ;;  %v4124_v8 = vpack.c.bf16 %v3111_v16, %v3110_v5  ;;  %v3054_v5 = vld [vmem:[#allocation5] sm:$0xf]  ;;  %v3124_v16 = vld [vmem:[%s4899_s9 + $0x70] sm:$0xff] }
 0xa86   :  { %4018 = vmatprep.subr.bf16.mxu1 %v4326_v27 }
 0xa89   :  { %4019 = vmatpush3.bf16.msra.mxu1 %v4326_v27  ;;  %v4754_v27 = vmov 0.0|0.0  }
 0xa8a   :  { %4123 = vmatprep.subr.bf16.mxu1 %v4754_v27 }
 0xa8c   :  { %4021 = vmatmul.mubr.bf16.vlgmr.msra.gmra.mrb[80].mxu1 %v5200_v56 }
 0xa8d   :  { %4024 = vmatprep.mubr.bf16.mxu1 %v5210_v10  ;;  %4125 = vmatpush3.bf16.msra.mxu1 %v4124_v8  ;;  %v3107_v8 = vpop.permute.xlu0 %3106 }
 0xa8e   :  { %4126 = vmatprep.subr.bf16.mxu1 %v4754_v27 }
 0xa94   :  { %4025 = vmatmul.mubr.bf16.gmra.mrb[84].mxu1 %v5207_v9 }
 0xa95   :  { %4028 = vmatprep.mubr.bf16.mxu1 %v5218_v55 }
 0xa9c   :  { %4029 = vmatmul.mubr.bf16.gmra.mrb[88].mxu1 %v5215_v51 }
 0xa9d   :  { %4032 = vmatprep.mubr.bf16.mxu1 %v5226_v12 }
 0xaa4   :  { %4033 = vmatmul.mubr.bf16.gmra.mrb[92].mxu1 %v5223_v11 }
 0xaa5   :  { %4120 = vmatprep.mubr.msk.f32.mxu1 %vm4753_vm0, %v4752_v53 }
 0xb5f   :  { %v4022_v43 = vpop.f32.mrb[80].mxu1 }
 0xb60   :  { %v2848_v56 = vadd.f32 %v4022_v43, %v3359_v41  ;;  %v2776_v57 = vpop.f32.mrb[81].mxu1  ;;  %v3114_v43 = vld [vmem:[%s4899_s9 + $0x20] sm:$0xff] }
 0xb61   :  { %v2846_v10 = vadd.f32 %v3359_v41, %v2776_v57  ;;  %v4023_v9 = vpop.f32.mrb[82].mxu1 }
 0xb62   :  { %v2849_v32 = vadd.f32 %v4023_v9, %v3359_v41  ;;  %v2779_v55 = vpop.f32.mrb[83].mxu1  ;;  %v2864_v51 = vmax.f32 %v2848_v56, 0.0  ;;  %v3115_v56 = vld [vmem:[%s4899_s9 + $0x28] sm:$0xff]  ;;  %v3117_v9 = vld [vmem:[%s4899_s9 + $0x38] sm:$0xff] }
 0xb63   :  { %v2847_v36 = vadd.f32 %v3359_v41, %v2779_v55  ;;  %v2862_v12 = vmax.f32 %v2846_v10, 0.0  ;;  %v4130_v57 = vpack.c.bf16 %v3115_v56, %v3114_v43  ;;  %v3116_v10 = vld [vmem:[%s4899_s9 + $0x30] sm:$0xff]  ;;  %v3118_v55 = vld [vmem:[%s4899_s9 + $0x40] sm:$0xff] }
 0xb64   :  { %v2865_v15 = vmax.f32 %v2849_v32, 0.0  ;;  %v4133_v32 = vpack.c.bf16 %v3117_v9, %v3116_v10  ;;  %v3369_v10 = vld [vmem:[%s4904_s17] ss:$0 sm:$0xff] }
 0xb65   :  { %v2863_v39 = vmax.f32 %v2847_v36, 0.0  ;;  %v3119_v36 = vld [vmem:[%s4899_s9 + $0x48] sm:$0xff] }
 0xb66   :  { %v2879_v11 = vpack.c.bf16 %v2865_v15, %v2864_v51  ;;  %v4136_v51 = vpack.c.bf16 %v3119_v36, %v3118_v55  ;;  %v3120_v15 = vld [vmem:[%s4899_s9 + $0x50] sm:$0xff] }
 0xb67   :  { %v2878_v4 = vpack.c.bf16 %v2863_v39, %v2862_v12  ;;  %v4026_v26 = vpop.f32.mrb[84].mxu1  ;;  %v3121_v12 = vld [vmem:[%s4899_s9 + $0x58] sm:$0xff] }
 0xb68   :  { %v2852_v34 = vadd.f32 %v4026_v26, %v3359_v41  ;;  %v2792_v52 = vpop.f32.mrb[85].mxu1  ;;  %v4139_v39 = vpack.c.bf16 %v3121_v12, %v3120_v15 }
 0xb69   :  { %v2850_v42 = vadd.f32 %v3359_v41, %v2792_v52  ;;  %v4027_v29 = vpop.f32.mrb[86].mxu1  ;;  %4052 = vmatprep.mubr.bf16.mxu0 %v2878_v4  ;;  %v3123_v4 = vld [vmem:[%s4899_s9 + $0x68] sm:$0xff]  ;;  %v3360_v52 = vld [vmem:[%s4894_s21] ss:$0 sm:$0xff]  ;;  %s4755_s21 = smov [#allocation25]  }
 0xb6a   :  { %v2853_v45 = vadd.f32 %v4027_v29, %v3359_v41  ;;  %v2795_v46 = vpop.f32.mrb[87].mxu1  ;;  %4053 = vmatmul.mubr.bf16.vlgmr.msra.gmra.mrb[80].mxu0 %v2879_v11  ;;  %v2868_v1 = vmax.f32 %v2852_v34, 0.0  ;;  %v3122_v11 = vld [vmem:[%s4899_s9 + $0x60] sm:$0xff]  ;;  %s3210_s19 = sshll.u32 %s4755_s21, 4  ;;  %s3211_s19 = int_to_ptr.vmem [resolvable:$true] %s3210_s19 }
 0xb6b   :  { %v2851_v7 = vadd.f32 %v3359_v41, %v2795_v46  ;;  %v2866_v49 = vmax.f32 %v2850_v42, 0.0  ;;  %v4142_v26 = vpack.c.bf16 %v3123_v4, %v3122_v11  ;;  %s4666_s25 = scalar_lea.vmem %s3211_s19, 128  ;;  %p4671_p1 = scmp.lt.s32.totalorder %s3211_s19, %s3211_s19 }
 0xb6c   :  { %v2869_v28 = vmax.f32 %v2853_v45, 0.0  ;;  %p4667_p0 = scmp.ne.s32.totalorder %s3211_s19, %s4666_s25  ;;  %p4672_p2 = scmp.lt.s32.totalorder %s4666_s25, %s4666_s25 }
 0xb6d   :  { %v2867_v54 = vmax.f32 %v2851_v7, 0.0 }
 0xb6e   :  { %v2881_v48 = vpack.c.bf16 %v2869_v28, %v2868_v1  ;;  %p4673_p3 = por %p4672_p2, %p4671_p1 }
 0xb6f   :  { %v2880_v60 = vpack.c.bf16 %v2867_v54, %v2866_v49  ;;  %v4030_v58 = vpop.f32.mrb[88].mxu1 }
 0xb70   :  { %v2856_v21 = vadd.f32 %v4030_v58, %v3359_v41  ;;  %v2808_v37 = vpop.f32.mrb[89].mxu1  ;;  %p4674_p4 = pnand %p4673_p3, %p4667_p0 }
 0xb71   :  { %v2854_v22 = vadd.f32 %v3359_v41, %v2808_v37  ;;  %v4031_v17 = vpop.f32.mrb[90].mxu1  ;;  %4056 = vmatprep.mubr.bf16.mxu0 %v2880_v60 }
 0xb72   :  { %v2857_v20 = vadd.f32 %v4031_v17, %v3359_v41  ;;  %v2811_v61 = vpop.f32.mrb[91].mxu1  ;;  %4057 = vmatmul.mubr.bf16.gmra.mrb[84].mxu0 %v2881_v48  ;;  %v2872_v62 = vmax.f32 %v2856_v21, 0.0 }
 0xb73   :  { %v2855_v44 = vadd.f32 %v3359_v41, %v2811_v61  ;;  %v2870_v18 = vmax.f32 %v2854_v22, 0.0 }
 0xb74   :  { %v2873_v30 = vmax.f32 %v2857_v20, 0.0 }
 0xb75   :  { %v2871_v63 = vmax.f32 %v2855_v44, 0.0 }
 0xb76   :  { %v2883_v35 = vpack.c.bf16 %v2873_v30, %v2872_v62 }
 0xb77   :  { %v2882_v38 = vpack.c.bf16 %v2871_v63, %v2870_v18  ;;  %v4034_v3 = vpop.f32.mrb[92].mxu1 }
 0xb78   :  { %v2860_v23 = vadd.f32 %v4034_v3, %v3359_v41  ;;  %v2824_v24 = vpop.f32.mrb[93].mxu1 }
 0xb79   :  { %v2858_v33 = vadd.f32 %v3359_v41, %v2824_v24  ;;  %v4035_v47 = vpop.f32.mrb[94].mxu1  ;;  %4060 = vmatprep.mubr.bf16.mxu0 %v2882_v38 }
 0xb7a   :  { %v2861_v6 = vadd.f32 %v4035_v47, %v3359_v41  ;;  %v2827_v40 = vpop.f32.mrb[95].mxu1  ;;  %4061 = vmatmul.mubr.bf16.gmra.mrb[88].mxu0 %v2883_v35  ;;  %v2876_v59 = vmax.f32 %v2860_v23, 0.0 }
 0xb7b   :  { %v2859_v25 = vadd.f32 %v3359_v41, %v2827_v40  ;;  %v2874_v0 = vmax.f32 %v2858_v33, 0.0  ;;  %v4127_v41 = vpack.c.bf16 %v3113_v13, %v3112_v31  ;;  %v3125_v31 = vld [vmem:[%s4899_s9 + $0x78] sm:$0xff] }
 0xb7c   :  { %v2877_v19 = vmax.f32 %v2861_v6, 0.0 }
 0xb7d   :  { %v2875_v2 = vmax.f32 %v2859_v25, 0.0  ;;  %4128 = vmatpush3.bf16.msra.mxu1 %v4127_v41 }
 0xb7e   :  { %v2885_v14 = vpack.c.bf16 %v2877_v19, %v2876_v59  ;;  %4129 = vmatprep.subr.bf16.mxu1 %v4754_v27 }
 0xb7f   :  { %v2884_v50 = vpack.c.bf16 %v2875_v2, %v2874_v0 }
 0xb81   :  { %4064 = vmatprep.mubr.bf16.mxu0 %v2884_v50  ;;  %4131 = vmatpush3.bf16.msra.mxu1 %v4130_v57 }
 0xb82   :  { %4065 = vmatmul.mubr.bf16.gmra.mrb[92].mxu0 %v2885_v14  ;;  %4132 = vmatprep.subr.bf16.mxu1 %v4754_v27 }
 0xb83   :  { %4084 = vmatprep.mubr.msk.bf16.mxu0 %vm4753_vm0, %v4752_v53 }
 0xb85   :  { %4134 = vmatpush3.bf16.msra.mxu1 %v4133_v32 }
 0xb86   :  { %4135 = vmatprep.subr.bf16.mxu1 %v4754_v27 }
 0xb89   :  { %4137 = vmatpush3.bf16.msra.mxu1 %v4136_v51 }
 0xb8a   :  { %4138 = vmatprep.subr.bf16.mxu1 %v4754_v27 }
 0xb8d   :  { %4140 = vmatpush3.bf16.msra.mxu1 %v4139_v39 }
 0xb8e   :  { %4141 = vmatprep.subr.bf16.mxu1 %v4754_v27 }
 0xb91   :  { %4143 = vmatpush3.bf16.msra.mxu1 %v4142_v26 }
 0xb92   :  { %4144 = vmatprep.subr.bf16.mxu1 %v4754_v27  ;;  %v4145_v27 = vpack.c.bf16 %v3125_v31, %v3124_v16 }
 0xb95   :  { %4146 = vmatpush3.bf16.msra.mxu1 %v4145_v27 }
 0xc3d   :  { %v4054_v34 = vpop.f32.mrb[80].mxu0 }
 0xc3e   :  { %v2991_v42 = vpop.f32.mrb[81].mxu0  ;;  %v3000_v45 = vadd.f32 %v4054_v34, %v3360_v52 }
 0xc3f   :  { %v4055_v29 = vpop.f32.mrb[82].mxu0  ;;  %v2992_v1 = vadd.f32 %v3360_v52, %v2991_v42 }
 0xc40   :  { %v3003_v46 = vadd.f32 %v4055_v29, %v3360_v52  ;;  %v2994_v7 = vpop.f32.mrb[83].mxu0 }
 0xc41   :  { %v2995_v28 = vadd.f32 %v3360_v52, %v2994_v7 }
 0xc42   :  { %v3056_v49 = vpack.c.bf16 %v3003_v46, %v3000_v45 }
 0xc43   :  { %v3055_v54 = vpack.c.bf16 %v2995_v28, %v2992_v1 }
 0xc45   :  { %v4058_v48 = vpop.f32.mrb[84].mxu0  ;;  %4069 = vmatpush3.bf16.msra.mxu0 %v3055_v54 }
 0xc46   :  { %v3007_v60 = vpop.f32.mrb[85].mxu0  ;;  %4070 = vmatprep.subr.bf16.mxu0 %v4752_v53  ;;  %v3016_v21 = vadd.f32 %v4058_v48, %v3360_v52 }
 0xc47   :  { %v4059_v58 = vpop.f32.mrb[86].mxu0  ;;  %v3008_v17 = vadd.f32 %v3360_v52, %v3007_v60 }
 0xc48   :  { %v3019_v37 = vadd.f32 %v4059_v58, %v3360_v52  ;;  %v3010_v22 = vpop.f32.mrb[87].mxu0 }
 0xc49   :  { %v3011_v20 = vadd.f32 %v3360_v52, %v3010_v22  ;;  %4071 = vmatpush3.bf16.msra.mxu0 %v3056_v49 }
 0xc4a   :  { %v3058_v61 = vpack.c.bf16 %v3019_v37, %v3016_v21  ;;  %4072 = vmatprep.subr.bf16.mxu0 %v4752_v53 }
 0xc4b   :  { %v3057_v44 = vpack.c.bf16 %v3011_v20, %v3008_v17 }
 0xc4d   :  { %v4062_v62 = vpop.f32.mrb[88].mxu0  ;;  %4073 = vmatpush3.bf16.msra.mxu0 %v3057_v44 }
 0xc4e   :  { %v3023_v30 = vpop.f32.mrb[89].mxu0  ;;  %4074 = vmatprep.subr.bf16.mxu0 %v4752_v53  ;;  %v3032_v63 = vadd.f32 %v4062_v62, %v3360_v52 }
 0xc4f   :  { %v4063_v18 = vpop.f32.mrb[90].mxu0  ;;  %v3024_v3 = vadd.f32 %v3360_v52, %v3023_v30 }
 0xc50   :  { %v3035_v35 = vadd.f32 %v4063_v18, %v3360_v52  ;;  %v3026_v38 = vpop.f32.mrb[91].mxu0 }
 0xc51   :  { %v3027_v23 = vadd.f32 %v3360_v52, %v3026_v38  ;;  %4075 = vmatpush3.bf16.msra.mxu0 %v3058_v61 }
 0xc52   :  { %v3060_v24 = vpack.c.bf16 %v3035_v35, %v3032_v63  ;;  %4076 = vmatprep.subr.bf16.mxu0 %v4752_v53 }
 0xc53   :  { %v3059_v33 = vpack.c.bf16 %v3027_v23, %v3024_v3 }
 0xc55   :  { %v4066_v47 = vpop.f32.mrb[92].mxu0  ;;  %4077 = vmatpush3.bf16.msra.mxu0 %v3059_v33 }
 0xc56   :  { %v3039_v6 = vpop.f32.mrb[93].mxu0  ;;  %4078 = vmatprep.subr.bf16.mxu0 %v4752_v53  ;;  %v3048_v25 = vadd.f32 %v4066_v47, %v3360_v52 }
 0xc57   :  { %v4067_v40 = vpop.f32.mrb[94].mxu0  ;;  %v3040_v0 = vadd.f32 %v3360_v52, %v3039_v6 }
 0xc58   :  { %v3051_v59 = vadd.f32 %v4067_v40, %v3360_v52  ;;  %v3042_v19 = vpop.f32.mrb[95].mxu0 }
 0xc59   :  { %v3043_v2 = vadd.f32 %v3360_v52, %v3042_v19  ;;  %4079 = vmatpush3.bf16.msra.mxu0 %v3060_v24 }
 0xc5a   :  { %v3062_v14 = vpack.c.bf16 %v3051_v59, %v3048_v25  ;;  %4080 = vmatprep.subr.bf16.mxu0 %v4752_v53 }
 0xc5b   :  { %v3061_v50 = vpack.c.bf16 %v3043_v2, %v3040_v0 }
 0xc5d   :  { %4081 = vmatpush3.bf16.msra.mxu0 %v3061_v50 }
 0xc5e   :  { %4082 = vmatprep.subr.bf16.mxu0 %v4752_v53 }
 0xc61   :  { %4083 = vmatpush3.bf16.msra.mxu0 %v3062_v14 }
 0xc64   :  { %4085 = vmatmul.mubr.bf16.vlgmr.msra.gmra.mrb[96].mxu0 %v3054_v5 }
 0xd37   :  { %v3097_v13 = vpop.f32.mrb[96].mxu0 }
 0xd38   :  { %v3109_v41 = vmul.f32 %v3107_v8, %v3097_v13  ;;  %v4086_v43 = vpop.f32.mrb[97].mxu0 }
 0xd39   :  { %v3100_v56 = vpop.f32.mrb[98].mxu0 }
 0xd3a   :  { %v4087_v57 = vpop.f32.mrb[99].mxu0  ;;  %4121 = vmatmul.mubr.f32.vlgmr.msra.gmra.mrb[96].mxu1 %v3109_v41 }
 0xe0d   :  { %v3199_v9 = vpop.f32.mrb[96].mxu1 }
 0xe0e   :  { %v3200_v32 = vadd.f32 %v3369_v10, %v3199_v9  ;;  %v4122_v53 = vpop.f32.mrb[97].mxu1 }
 0xe10   :  { %3203 = vst [vmem:[#allocation25] sm:$0xff] %v3200_v32 }
 0xe11   :  { %4677 = shalt.err (!%p4674_p4)
}
 0xe12   :  { %s4678_s9 = scalar_lea.hbm %s4909_s5, 128 }
 0xe13   :  { %p4679_p5 = scmp.ne.s32.totalorder %s4909_s5, %s4678_s9  ;;  %p4682_p6 = scmp.lt.u32.totalorder %s4678_s9, %s4909_s5 }
 0xe15   :  { %p4684_p7 = pnand %p4682_p6, %p4679_p5 }
 0xe17   :  { %4687 = shalt.err (!%p4684_p7)
}
 0xe18   :  { %3213 = dma.vmem_to_hbm [thread:$0]  %s3211_s19, 128, %s4909_s5, [#allocation4]  }
 0xe19   :  { %4704 = dma.done.wait [#allocation4], 128  }
 0xe1a   :  { %4705 = vsyncadd [#allocation4], 4294967168 }
 0xe1b   :  { %3217 = vsyncpa [#allocation3], 1 }
 0xe1c   :  { %3218 = vsyncpa [#allocation6], 1 }
 0xe1d   :  { %3219 = vsyncpa [#allocation9], 1 }
 0xe1e   :  { %3220 = vsyncpa [#allocation12], 1 }
 0xe1f   :  { %3221 = vsyncpa [#allocation15], 1 }
 0xe20   :  { %3222 = vsyncpa [#allocation18], 1 }
 0xe21   :  { %3223 = vsyncpa [#allocation21], 1 }
 0xe22   :  { %3224 = vsyncpa [#allocation24], 1 }
 0xe23   :  { %3225 = vsyncpa [#allocation4], 1 }

</bundles_post_ra>
